<compile_context>
chip_gen: v7x
topology: tpu7x:2x2x1
jax: 0.10.0
libtpu: 0.0.40
codegen_flags: <defaults>
</compile_context>

<pallas_src>
import jax
import jax.numpy as jnp
from jax.experimental import pallas as pl
from jax.experimental.pallas import tpu as pltpu


def neighbor_attention_kernel(lat_ref, neigh_ref, w1c_ref, w1nbd_ref, b1_ref,
                              sw2_ref, r_ref, t_ref, out_ref):
    w1c = w1c_ref[...]                      # [D,   K*D] tiled central weight
    w1nbd = w1nbd_ref[...]                  # [K*D, K*D] block-diag neighbor weight
    sw2 = sw2_ref[...]                      # [K*D, K  ] kron(I_K, w2)
    r_mat = r_ref[...]                      # [K,   K*D] 0/1 lane expander
    t_mat = t_ref[...]                      # [K*D, D  ] 0/1 block-sum
    wdt = w1c.dtype                         # MXU operand dtype (bf16 or f32)

    lat = lat_ref[...].astype(wdt)          # [TN, D]
    neigh = neigh_ref[...]                  # [TN, K*D]  already in wdt

    # h_k = relu(lat @ W1c + neigh_k @ W1n + b1), all K blocks at once,
    # lane-dense (the tiled W1c broadcasts the central term across blocks on
    # the MXU instead of the VPU/XLU).
    cb = jnp.dot(lat, w1c, preferred_element_type=jnp.float32)        # [TN, K*D]
    nh = jnp.dot(neigh, w1nbd, preferred_element_type=jnp.float32)    # [TN, K*D]
    h = jnp.maximum(cb + nh + b1_ref[...], 0.0)                       # [TN, K*D] f32

    # logits[:, k] = h_k @ w2  (b2 omitted: a uniform offset cancels in softmax)
    logits = jnp.dot(h.astype(wdt), sw2,
                     preferred_element_type=jnp.float32)              # [TN, K]

    # Numerically-stable softmax over K; normalization deferred.
    m = jnp.max(logits, axis=-1, keepdims=True)                       # [TN, 1]
    e = jnp.exp(logits - m)                                           # [TN, K]
    denom = jnp.sum(e, axis=-1, keepdims=True)                        # [TN, 1]

    # Broadcast the (unnormalized) weights across each D-wide lane block via
    # the MXU, multiply once on the VPU, then block-sum via the MXU.
    w_lanes = jnp.dot(e.astype(wdt), r_mat,
                      preferred_element_type=jnp.float32)             # [TN, K*D]
    weighted = neigh.astype(jnp.float32) * w_lanes                    # [TN, K*D]
    acc = jnp.dot(weighted.astype(wdt), t_mat,
                  preferred_element_type=jnp.float32)                 # [TN, D]

    out = acc * pl.reciprocal(denom, approx=True)                     # [TN, D]
    out_ref[...] = out.astype(out_ref.dtype)


def _pick_tile(n, requested):
    """Largest tile <= requested that divides n, is a multiple of 8, and keeps
    >= 2 grid steps when possible (so v7x's two TensorCores both get work)."""
    cap = n if n < 16 else max(8, n // 2)
    t = max(8, min(requested, cap))
    t -= t % 8
    while n % t:
        t -= 8
    return t


def neighbor_attention(latents, neighbors, w1, b1, w2, b2=None, *,
                       tile_n=512, compute_dtype=jnp.bfloat16,
                       vmem_limit_bytes=32 * 1024 * 1024):
    """latents: [N, D] f32, neighbors: [N, K] int32.
    w1: [2D, D], b1: [D], w2: [D, 1], b2: scalar (JAX (in, out) convention).
    b2 is accepted for API parity but unused: it cancels inside the softmax.
    compute_dtype controls the neighbor-gather dtype and the MXU operand dtype
    (accumulation is always f32)."""
    del b2
    N, D = latents.shape
    K = neighbors.shape[1]
    KD = K * D
    # TODO(synk): ragged N (not a multiple of 8) would need upstream padding.
    assert N % 8 == 0, N

    tile_n = _pick_tile(N, tile_n)
    cdt = jnp.dtype(compute_dtype)

    # Glue: data-dependent integer row gather of neighbor features, done in the
    # narrow compute dtype and packed lane-dense as [N, K*D] (free reshape).
    neigh2d = latents.astype(cdt)[neighbors].reshape(N, KD)

    w1c = w1[:D, :]                                                   # central half
    w1n = w1[D:, :]                                                   # neighbor half
    eye_k = jnp.eye(K, dtype=w1.dtype)
    w1c_t = jnp.tile(w1c, (1, K)).astype(cdt)                         # [D,   K*D]
    w1n_bd = jnp.kron(eye_k, w1n).astype(cdt)                         # [K*D, K*D]
    b1_t = jnp.tile(b1.reshape(1, D), (1, K)).astype(jnp.float32)     # [1,   K*D]
    sw2 = jnp.kron(eye_k, w2.reshape(D, 1)).astype(cdt)               # [K*D, K  ]
    r_mat = jnp.kron(eye_k, jnp.ones((1, D), w1.dtype)).astype(cdt)   # [K,   K*D]
    t_mat = jnp.tile(jnp.eye(D, dtype=w1.dtype), (K, 1)).astype(cdt)  # [K*D, D  ]

    grid = (N // tile_n,)
    return pl.pallas_call(
        neighbor_attention_kernel,
        out_shape=jax.ShapeDtypeStruct((N, D), latents.dtype),
        grid_spec=pltpu.PrefetchScalarGridSpec(
            num_scalar_prefetch=0,
            grid=grid,
            in_specs=[
                pl.BlockSpec((tile_n, D), lambda i: (i, 0)),     # latents tile (f32)
                pl.BlockSpec((tile_n, KD), lambda i: (i, 0)),    # neighbor feats, lane-dense
                pl.BlockSpec((D, KD), lambda i: (0, 0)),         # tiled W1c
                pl.BlockSpec((KD, KD), lambda i: (0, 0)),        # block-diag W1n
                pl.BlockSpec((1, KD), lambda i: (0, 0)),         # tiled b1 (f32)
                pl.BlockSpec((KD, K), lambda i: (0, 0)),         # kron(I, w2)
                pl.BlockSpec((K, KD), lambda i: (0, 0)),         # lane expander
                pl.BlockSpec((KD, D), lambda i: (0, 0)),         # block-sum matrix
            ],
            out_specs=pl.BlockSpec((tile_n, D), lambda i: (i, 0)),
        ),
        compiler_params=pltpu.CompilerParams(
            dimension_semantics=("parallel",),
            vmem_limit_bytes=vmem_limit_bytes,
        ),
    )(latents, neigh2d, w1c_t, w1n_bd, b1_t, sw2, r_mat, t_mat)


def reference_forward(latents, neighbors, w1, b1, w2, b2):
    """Pure-JAX mirror of the PyTorch NeighborAttention.forward (b2 included)."""
    neigh = latents[neighbors]                                   # [N, K, D]
    central = jnp.broadcast_to(latents[:, None, :], neigh.shape)
    pair = jnp.concatenate([central, neigh], axis=-1)            # [N, K, 2D]
    h = jnp.maximum(pair @ w1 + b1, 0.0)
    logits = (h @ w2)[..., 0] + b2
    w = jax.nn.softmax(logits, axis=-1)
    return jnp.sum(w[..., None] * neigh, axis=1)


if __name__ == "__main__":
    # Small demo shapes: 512 vertices, 8 neighbors each, latent dim 32.
    N, K, D = 512, 8, 32

    key = jax.random.PRNGKey(0)
    k_lat, k_nbr, k_w1, k_b1, k_w2, k_b2 = jax.random.split(key, 6)

    latents = jax.random.normal(k_lat, (N, D), dtype=jnp.float32)
    neighbors = jax.random.randint(k_nbr, (N, K), 0, N, dtype=jnp.int32)

    # nn.Linear(2D, D) and nn.Linear(D, 1) parameters in JAX (in, out) convention.
    w1 = jax.random.normal(k_w1, (2 * D, D), dtype=jnp.float32) * 0.1
    b1 = jax.random.normal(k_b1, (D,), dtype=jnp.float32) * 0.1
    w2 = jax.random.normal(k_w2, (D, 1), dtype=jnp.float32) * 0.1
    b2 = jax.random.normal(k_b2, (), dtype=jnp.float32) * 0.1

    ref = reference_forward(latents, neighbors, w1, b1, w2, b2)

    # 1) Exact-math path (f32 gather + f32 MXU operands): tight check.
    out_f32 = neighbor_attention(latents, neighbors, w1, b1, w2, b2,
                                 compute_dtype=jnp.float32)
    out_f32 = jax.block_until_ready(out_f32)
    assert out_f32.shape == (N, D)
    assert jnp.allclose(out_f32, ref, atol=5e-3, rtol=5e-3), "f32 path mismatch"

    # 2) Production path (bf16 gather + bf16 MXU operands, f32 accumulation):
    #    tolerance reflects the bf16 neighbor gather / operand rounding.
    out_bf16 = neighbor_attention(latents, neighbors, w1, b1, w2, b2,
                                  compute_dtype=jnp.bfloat16)
    out_bf16 = jax.block_until_ready(out_bf16)
    assert out_bf16.shape == (N, D)
    assert jnp.allclose(out_bf16, ref, atol=3e-2, rtol=3e-2), "bf16 path mismatch"

    print("KERNEL_OK")
</pallas_src>

<mosaic_0001>
module attributes {stable_mosaic.version = 11 : i64} {
  func.func @neighbor_attention_kernel(%arg0: i32, %arg1: memref<256x32xf32, #tpu.memory_space<vmem>>, %arg2: memref<256x256xf32, #tpu.memory_space<vmem>>, %arg3: memref<32x256xf32, #tpu.memory_space<vmem>>, %arg4: memref<256x256xf32, #tpu.memory_space<vmem>>, %arg5: memref<1x256xf32, #tpu.memory_space<vmem>>, %arg6: memref<256x8xf32, #tpu.memory_space<vmem>>, %arg7: memref<8x256xf32, #tpu.memory_space<vmem>>, %arg8: memref<256x32xf32, #tpu.memory_space<vmem>>, %arg9: memref<256x32xf32, #tpu.memory_space<vmem>>) attributes {dimension_semantics = [#tpu.dimension_semantics<parallel>], iteration_bounds = array<i64: 2>, scalar_prefetch = 0 : i64, scratch_operands = 0 : i64, tpu.core_type = #tpu.core_type<tc>, window_params = [{transform_indices = @transform_0, window_bounds = array<i64: 256, 32>}, {transform_indices = @transform_1, window_bounds = array<i64: 256, 256>}, {pipeline_mode = #tpu.pipeline_mode<synchronous>, transform_indices = @transform_2, window_bounds = array<i64: 32, 256>}, {pipeline_mode = #tpu.pipeline_mode<synchronous>, transform_indices = @transform_3, window_bounds = array<i64: 256, 256>}, {pipeline_mode = #tpu.pipeline_mode<synchronous>, transform_indices = @transform_4, window_bounds = array<i64: 1, 256>}, {pipeline_mode = #tpu.pipeline_mode<synchronous>, transform_indices = @transform_5, window_bounds = array<i64: 256, 8>}, {pipeline_mode = #tpu.pipeline_mode<synchronous>, transform_indices = @transform_6, window_bounds = array<i64: 8, 256>}, {pipeline_mode = #tpu.pipeline_mode<synchronous>, transform_indices = @transform_7, window_bounds = array<i64: 256, 32>}, {transform_indices = @transform_8, window_bounds = array<i64: 256, 32>}]} {
    %c0 = arith.constant 0 : index
    %c0_0 = arith.constant 0 : index
    %0 = vector.load %arg3[%c0, %c0_0] : memref<32x256xf32, #tpu.memory_space<vmem>>, vector<32x256xf32>
    %c0_1 = arith.constant 0 : index
    %c0_2 = arith.constant 0 : index
    %1 = vector.load %arg4[%c0_1, %c0_2] : memref<256x256xf32, #tpu.memory_space<vmem>>, vector<256x256xf32>
    %c0_3 = arith.constant 0 : index
    %c0_4 = arith.constant 0 : index
    %2 = vector.load %arg6[%c0_3, %c0_4] : memref<256x8xf32, #tpu.memory_space<vmem>>, vector<256x8xf32>
    %c0_5 = arith.constant 0 : index
    %c0_6 = arith.constant 0 : index
    %3 = vector.load %arg7[%c0_5, %c0_6] : memref<8x256xf32, #tpu.memory_space<vmem>>, vector<8x256xf32>
    %c0_7 = arith.constant 0 : index
    %c0_8 = arith.constant 0 : index
    %4 = vector.load %arg8[%c0_7, %c0_8] : memref<256x32xf32, #tpu.memory_space<vmem>>, vector<256x32xf32>
    %c0_9 = arith.constant 0 : index
    %c0_10 = arith.constant 0 : index
    %5 = vector.load %arg1[%c0_9, %c0_10] : memref<256x32xf32, #tpu.memory_space<vmem>>, vector<256x32xf32>
    %c0_11 = arith.constant 0 : index
    %c0_12 = arith.constant 0 : index
    %6 = vector.load %arg2[%c0_11, %c0_12] : memref<256x256xf32, #tpu.memory_space<vmem>>, vector<256x256xf32>
    %cst = arith.constant dense<0.000000e+00> : vector<256x256xf32>
    %7 = tpu.matmul %5, %0, %cst {dimension_numbers = #tpu.dot_dimension_numbers<[1], [0], [0], [1], [0, 0, 1, 1], [], []>} : vector<256x32xf32>, vector<32x256xf32>, vector<256x256xf32> -> vector<256x256xf32>
    %cst_13 = arith.constant dense<0.000000e+00> : vector<256x256xf32>
    %8 = tpu.matmul %6, %1, %cst_13 {dimension_numbers = #tpu.dot_dimension_numbers<[1], [0], [0], [1], [0, 0, 1, 1], [], []>} : vector<256x256xf32>, vector<256x256xf32>, vector<256x256xf32> -> vector<256x256xf32>
    %9 = arith.addf %7, %8 : vector<256x256xf32>
    %c0_14 = arith.constant 0 : index
    %c0_15 = arith.constant 0 : index
    %10 = vector.load %arg5[%c0_14, %c0_15] : memref<1x256xf32, #tpu.memory_space<vmem>>, vector<1x256xf32>
    %11 = vector.broadcast %10 : vector<1x256xf32> to vector<256x256xf32>
    %12 = arith.addf %9, %11 : vector<256x256xf32>
    %cst_16 = arith.constant 0.000000e+00 : f32
    %13 = vector.broadcast %cst_16 : f32 to vector<256x256xf32>
    %14 = arith.maximumf %12, %13 : vector<256x256xf32>
    %cst_17 = arith.constant dense<0.000000e+00> : vector<256x8xf32>
    %15 = tpu.matmul %14, %2, %cst_17 {dimension_numbers = #tpu.dot_dimension_numbers<[1], [0], [0], [1], [0, 0, 1, 1], [], []>} : vector<256x256xf32>, vector<256x8xf32>, vector<256x8xf32> -> vector<256x8xf32>
    %cst_18 = arith.constant dense<0xFF800000> : vector<256xf32>
    %16 = vector.multi_reduction <maximumf>, %15, %cst_18 [1] : vector<256x8xf32> to vector<256xf32>
    %17 = vector.shape_cast %16 : vector<256xf32> to vector<256x1xf32>
    %18 = vector.broadcast %17 : vector<256x1xf32> to vector<256x8xf32>
    %19 = arith.subf %15, %18 : vector<256x8xf32>
    %20 = math.exp %19 : vector<256x8xf32>
    %cst_19 = arith.constant dense<0.000000e+00> : vector<256xf32>
    %21 = vector.multi_reduction <add>, %20, %cst_19 [1] : vector<256x8xf32> to vector<256xf32>
    %22 = vector.shape_cast %21 : vector<256xf32> to vector<256x1xf32>
    %cst_20 = arith.constant dense<0.000000e+00> : vector<256x256xf32>
    %23 = tpu.matmul %20, %3, %cst_20 {dimension_numbers = #tpu.dot_dimension_numbers<[1], [0], [0], [1], [0, 0, 1, 1], [], []>} : vector<256x8xf32>, vector<8x256xf32>, vector<256x256xf32> -> vector<256x256xf32>
    %24 = arith.mulf %6, %23 : vector<256x256xf32>
    %cst_21 = arith.constant dense<0.000000e+00> : vector<256x32xf32>
    %25 = tpu.matmul %24, %4, %cst_21 {dimension_numbers = #tpu.dot_dimension_numbers<[1], [0], [0], [1], [0, 0, 1, 1], [], []>} : vector<256x256xf32>, vector<256x32xf32>, vector<256x32xf32> -> vector<256x32xf32>
    %26 = tpu.reciprocal %22 {approx = true} : vector<256x1xf32> -> vector<256x1xf32>
    %27 = vector.broadcast %26 : vector<256x1xf32> to vector<256x32xf32>
    %28 = arith.mulf %25, %27 : vector<256x32xf32>
    %c0_22 = arith.constant 0 : index
    %c0_23 = arith.constant 0 : index
    %29 = vector.load %arg9[%c0_22, %c0_23] : memref<256x32xf32, #tpu.memory_space<vmem>>, vector<256x32xf32>
    tpu.vector_store %arg9[%c0_22, %c0_23], %28 {strides = array<i32>} : memref<256x32xf32, #tpu.memory_space<vmem>>, vector<256x32xf32>,
    return
  }
  func.func @transform_0(%arg0: i32) -> (i32, i32) {
    %c0_i32 = arith.constant 0 : i32
    %c0_i32_0 = arith.constant 0 : i32
    return %arg0, %c0_i32 : i32, i32
  }
  func.func @transform_1(%arg0: i32) -> (i32, i32) {
    %c0_i32 = arith.constant 0 : i32
    %c0_i32_0 = arith.constant 0 : i32
    return %arg0, %c0_i32 : i32, i32
  }
  func.func @transform_2(%arg0: i32) -> (i32, i32) {
    %c0_i32 = arith.constant 0 : i32
    %c0_i32_0 = arith.constant 0 : i32
    %c0_i32_1 = arith.constant 0 : i32
    return %c0_i32, %c0_i32_0 : i32, i32
  }
  func.func @transform_3(%arg0: i32) -> (i32, i32) {
    %c0_i32 = arith.constant 0 : i32
    %c0_i32_0 = arith.constant 0 : i32
    %c0_i32_1 = arith.constant 0 : i32
    return %c0_i32, %c0_i32_0 : i32, i32
  }
  func.func @transform_4(%arg0: i32) -> (i32, i32) {
    %c0_i32 = arith.constant 0 : i32
    %c0_i32_0 = arith.constant 0 : i32
    %c0_i32_1 = arith.constant 0 : i32
    return %c0_i32, %c0_i32_0 : i32, i32
  }
  func.func @transform_5(%arg0: i32) -> (i32, i32) {
    %c0_i32 = arith.constant 0 : i32
    %c0_i32_0 = arith.constant 0 : i32
    %c0_i32_1 = arith.constant 0 : i32
    return %c0_i32, %c0_i32_0 : i32, i32
  }
  func.func @transform_6(%arg0: i32) -> (i32, i32) {
    %c0_i32 = arith.constant 0 : i32
    %c0_i32_0 = arith.constant 0 : i32
    %c0_i32_1 = arith.constant 0 : i32
    return %c0_i32, %c0_i32_0 : i32, i32
  }
  func.func @transform_7(%arg0: i32) -> (i32, i32) {
    %c0_i32 = arith.constant 0 : i32
    %c0_i32_0 = arith.constant 0 : i32
    %c0_i32_1 = arith.constant 0 : i32
    return %c0_i32, %c0_i32_0 : i32, i32
  }
  func.func @transform_8(%arg0: i32) -> (i32, i32) {
    %c0_i32 = arith.constant 0 : i32
    %c0_i32_0 = arith.constant 0 : i32
    return %arg0, %c0_i32 : i32, i32
  }
}

</mosaic_0001>

<bundles_post_ra>
// kernel: tpu_custom_call.1
= control target key start
LH: loop header
LB: loop body
LE: loop exit
PB: predicated region body
PF: predicated region fallthrough
CT: control target
= control target key end

     0   :  { %13 = vsyncpa [#allocation3], 0  ;;  %s3316_s27 = smov 0   ;;  %s4357_s0 = inlined_call_operand.vmem [shape: f32[512,32], index: 0, kind: input, shape index: {}]   ;;  %s4358_s1 = inlined_call_operand.vmem [shape: f32[512,256], index: 1, kind: input, shape index: {}]   ;;  %s4359_s2 = inlined_call_operand.vmem [shape: f32[32,256], index: 2, kind: input, shape index: {}]   ;;  %s4360_s3 = inlined_call_operand.hbm [shape: f32[256,256], index: 3, kind: input, shape index: {}]   ;;  %s4361_s4 = inlined_call_operand.vmem [shape: f32[1,256], index: 4, kind: input, shape index: {}]   ;;  %s4362_s5 = inlined_call_operand.vmem [shape: f32[256,8], index: 5, kind: input, shape index: {}]   ;;  %s4363_s6 = inlined_call_operand.vmem [shape: f32[8,256], index: 6, kind: input, shape index: {}]   ;;  %s4364_s7 = inlined_call_operand.vmem [shape: f32[256,32], index: 7, kind: input, shape index: {}]   ;;  %s4365_s8 = inlined_call_operand.vmem [shape: f32[512,32], index: 8, kind: output, shape index: {}]  }
   0x1 LB: > { %s2666_s28 = sadd.s32 4294967295, %s3264_s27   ;;  %p2668_p0 = scmp.ge.s32.totalorder %s3264_s27, 1  ;;  %s3264_s27 = sphi %s3316_s27, %s19_s27  }
   0x2   : > { %p228_p1 = scmp.lt.s32.totalorder %s3264_s27, 3  ;;  %s3266_s29 = smov [#allocation2]  }
   0x3   : > { %s243_s30 = sshll.u32 %s3266_s29, 4  ;;  %p3330_p3 = scmp.eq.s32.totalorder %s2666_s28, 0  ;;  %s244_s30 = int_to_ptr.vmem [resolvable:$true] %s243_s30 }
   0x4   : > { %p3324_p2 = pnand %p2668_p0, %p228_p1  ;;  %s3226_s14 = scalar_lea.hbm %s4360_s3, 8192 }
   0x5   : > { %s4370_s10 = scalar_select %p3330_p3, 1, 0 }
   0x6   : > { %s4369_s9 = scalar_select %p3324_p2, 1, 0 }
   0x7   : > { %p3015_p4 = pneg %p3324_p2  ;;  %p3227_p6 = scmp.ne.s32.totalorder %s4360_s3, %s3226_s14 }
   0x8   : > { %p3233_p10 = scmp.lt.u32.totalorder %s3226_s14, %s4360_s3 }
   0x9   : > { %p3338_p5 = pnand %p3330_p3, %p3015_p4 }
   0xb   : > { %p3228_p7 = pneg %p3338_p5 }
   0xd   : > { %p3229_p8 = pnand %p3228_p7, %p3227_p6 }
   0xf   : > { %p3230_p9 = pneg %p3229_p8 }
  0x11   : > { %p3235_p11 = pnand %p3233_p10, %p3230_p9 }
  0x13   : > { %3238 = shalt.err (!%p3235_p11)
}
  0x14   : > { %s3239_s19 = scalar_lea.vmem %s244_s30, 8192  ;;  %p3247_p1 = scmp.lt.s32.totalorder %s244_s30, %s244_s30 }
  0x15   : > { %p3240_p12 = scmp.ne.s32.totalorder %s244_s30, %s3239_s19  ;;  %p3248_p4 = scmp.lt.s32.totalorder %s3239_s19, %s3239_s19 }
  0x17   : > { %p3242_p13 = pnand %p3240_p12, %p3228_p7  ;;  %p3249_p3 = por %p3248_p4, %p3247_p1 }
  0x19   : > { %p3243_p0 = pneg %p3242_p13 }
  0x1b   : > { %p3250_p2 = pnand %p3249_p3, %p3243_p0 }
  0x1d   : > { %3253 = shalt.err (!%p3250_p2)
}
  0x1e   : > { %s3267_s20 = smov 256   ;;  %s3268_s21 = smov 16  }
  0x1f   : > { %3018 = dma.hbm_to_vmem [thread:$0]  (!%p3338_p5), %s4360_s3, 8192, %s244_s30, [#allocation3], %s3267_s20, %s3267_s20, %s3268_s21  }
  0x20   : > { %p4372_p6 = scmp.ne.s32.totalorder %s4369_s9, 0 }
  0x21   : > { %p4373_p8 = scmp.ne.s32.totalorder (!%p4372_p6), %s4370_s10, 0 }
  0x22   : > { %290 = sbr.rel (%p4372_p6) target bundleno = 1318 (0x526), region = 52 }
  0x29   : > { %3259 = dma.done.wait (%p4373_p8), [#allocation3], 8192  }
  0x2a   : > { %3261 = vsyncadd (%p4373_p8), [#allocation3], 4294959104  ;;  %v358_v0 = vld [vmem:[#allocation2 + $0x8] sm:$0xff]  ;;  %v360_v1 = vld [vmem:[#allocation2 + $0x18] sm:$0xff]  ;;  %s2673_s24 = sshll.u32 %s2666_s28, 5  ;;  %vm840_vm0 = vcmask 261120  }
  0x2b   : > { %v357_v2 = vld [vmem:[#allocation2] sm:$0xff]  ;;  %v2747_v3 = vpack.c.bf16 %v360_v1, %v358_v0  ;;  %v359_v4 = vld [vmem:[#allocation2 + $0x10] sm:$0xff]  ;;  %v362_v5 = vld [vmem:[#allocation2 + $0x28] sm:$0xff]  ;;  %p331_p2 = scmp.lt.s32.totalorder %s2673_s24, 63  ;;  %vm1559_vm1 = vcmask 64512  }
  0x2c   : > { %v364_v6 = vld [vmem:[#allocation2 + $0x38] sm:$0xff]  ;;  %v2749_v7 = vpack.c.bf16 %v359_v4, %v357_v2  ;;  %v361_v9 = vld [vmem:[#allocation2 + $0x20] sm:$0xff]  ;;  %v363_v10 = vld [vmem:[#allocation2 + $0x30] sm:$0xff] }
  0x2d   : > { %v2751_v8 = vpack.c.bf16 %v364_v6, %v362_v5  ;;  %v366_v11 = vld [vmem:[#allocation2 + $0x48] sm:$0xff]  ;;  %2748 = vmatprep.subr.bf16.mxu0 %v2747_v3  ;;  %v368_v12 = vld [vmem:[#allocation2 + $0x58] sm:$0xff]  ;;  %2915 = vmatprep.subr.bf16.mxu1 %v2747_v3  ;;  %v2753_v13 = vpack.c.bf16 %v363_v10, %v361_v9  ;;  %v365_v15 = vld [vmem:[#allocation2 + $0x40] sm:$0xff]  ;;  %s4375_s24 = smov (!%p331_p2, %s2673_s24), 63 }
  0x2e   : > { %2750 = vmatpush1.bf16.msra.mxu0 %v2749_v7  ;;  %2931 = vmatpush1.bf16.msra.mxu1 %v2749_v7  ;;  %v2755_v14 = vpack.c.bf16 %v368_v12, %v366_v11  ;;  %v367_v16 = vld [vmem:[#allocation2 + $0x50] sm:$0xff]  ;;  %v370_v17 = vld [vmem:[#allocation2 + $0x68] sm:$0xff]  ;;  %v372_v18 = vld [vmem:[#allocation2 + $0x78] sm:$0xff]  ;;  %s2746_s25 = sshll.u32 %s4375_s24, 4 }
  0x2f   : > { %2752 = vmatprep.subr.bf16.mxu0 %v2751_v8  ;;  %2916 = vmatprep.subr.bf16.mxu1 %v2751_v8  ;;  %v2757_v19 = vpack.c.bf16 %v367_v16, %v365_v15  ;;  %v2759_v20 = vpack.c.bf16 %v372_v18, %v370_v17  ;;  %v369_v21 = vld [vmem:[#allocation2 + $0x60] sm:$0xff]  ;;  %v371_v22 = vld [vmem:[#allocation2 + $0x70] sm:$0xff]  ;;  %v374_v23 = vld [vmem:[#allocation2 + $0x88] sm:$0xff]  ;;  %s3372_s29 = scalar_lea.vmem %s4358_s1, %s2746_s25  ;;  %s2674_s25 = sshll.u32 %s4375_s24, 3 }
  0x30   : > { %v376_v24 = vld [vmem:[#allocation2 + $0x98] sm:$0xff]  ;;  %v2761_v25 = vpack.c.bf16 %v371_v22, %v369_v21  ;;  %v373_v27 = vld [vmem:[#allocation2 + $0x80] sm:$0xff]  ;;  %v375_v28 = vld [vmem:[#allocation2 + $0x90] sm:$0xff]  ;;  %s3468_s30 = scalar_lea.vmem %s4357_s0, %s2674_s25 }
  0x31   : > { %v2763_v26 = vpack.c.bf16 %v376_v24, %v374_v23  ;;  %v378_v29 = vld [vmem:[#allocation2 + $0xa8] sm:$0xff]  ;;  %v380_v30 = vld [vmem:[#allocation2 + $0xb8] sm:$0xff]  ;;  %v2765_v31 = vpack.c.bf16 %v375_v28, %v373_v27  ;;  %v377_v33 = vld [vmem:[#allocation2 + $0xa0] sm:$0xff] }
  0x32   : > { %2754 = vmatpush1.bf16.msra.mxu0 %v2753_v13  ;;  %2932 = vmatpush1.bf16.msra.mxu1 %v2753_v13  ;;  %v2767_v32 = vpack.c.bf16 %v380_v30, %v378_v29  ;;  %v379_v34 = vld [vmem:[#allocation2 + $0xb0] sm:$0xff]  ;;  %v382_v35 = vld [vmem:[#allocation2 + $0xc8] sm:$0xff]  ;;  %v384_v36 = vld [vmem:[#allocation2 + $0xd8] sm:$0xff] }
  0x33   : > { %2756 = vmatprep.subr.bf16.mxu0 %v2755_v14  ;;  %2917 = vmatprep.subr.bf16.mxu1 %v2755_v14  ;;  %v2769_v37 = vpack.c.bf16 %v379_v34, %v377_v33  ;;  %v2771_v38 = vpack.c.bf16 %v384_v36, %v382_v35  ;;  %v381_v39 = vld [vmem:[#allocation2 + $0xc0] sm:$0xff]  ;;  %v383_v40 = vld [vmem:[#allocation2 + $0xd0] sm:$0xff]  ;;  %v520_v41 = vld [vmem:[%s3372_s29 + $0x8] sm:$0xff] }
  0x34   : > { %v386_v42 = vld [vmem:[#allocation2 + $0xe8] sm:$0xff]  ;;  %v388_v43 = vld [vmem:[#allocation2 + $0xf8] sm:$0xff]  ;;  %647 = vmatprep.mubr.f32.mxu0 %v520_v41  ;;  %v2773_v44 = vpack.c.bf16 %v383_v40, %v381_v39  ;;  %v385_v46 = vld [vmem:[#allocation2 + $0xe0] sm:$0xff] }
  0x35   : > { %v2775_v45 = vpack.c.bf16 %v388_v43, %v386_v42  ;;  %v387_v47 = vld [vmem:[#allocation2 + $0xf0] sm:$0xff]  ;;  %v390_v48 = vld [vmem:[#allocation2 + $0x108] sm:$0xff]  ;;  %v392_v49 = vld [vmem:[#allocation2 + $0x118] sm:$0xff] }
  0x36   : > { %2758 = vmatpush1.bf16.msra.mxu0 %v2757_v19  ;;  %2933 = vmatpush1.bf16.msra.mxu1 %v2757_v19  ;;  %v2777_v50 = vpack.c.bf16 %v387_v47, %v385_v46  ;;  %v2779_v51 = vpack.c.bf16 %v392_v49, %v390_v48  ;;  %v389_v52 = vld [vmem:[#allocation2 + $0x100] sm:$0xff]  ;;  %v391_v53 = vld [vmem:[#allocation2 + $0x110] sm:$0xff]  ;;  %v394_v54 = vld [vmem:[#allocation2 + $0x128] sm:$0xff] }
  0x37   : > { %2760 = vmatprep.subr.bf16.mxu0 %v2759_v20  ;;  %2918 = vmatprep.subr.bf16.mxu1 %v2759_v20  ;;  %v396_v55 = vld [vmem:[#allocation2 + $0x138] sm:$0xff]  ;;  %v2781_v56 = vpack.c.bf16 %v391_v53, %v389_v52  ;;  %v393_v58 = vld [vmem:[#allocation2 + $0x120] sm:$0xff]  ;;  %v395_v59 = vld [vmem:[#allocation2 + $0x130] sm:$0xff] }
  0x38   : > { %v2783_v57 = vpack.c.bf16 %v396_v55, %v394_v54  ;;  %v398_v60 = vld [vmem:[#allocation2 + $0x148] sm:$0xff]  ;;  %v400_v61 = vld [vmem:[#allocation2 + $0x158] sm:$0xff]  ;;  %v2785_v62 = vpack.c.bf16 %v395_v59, %v393_v58  ;;  %v397_v0 = vld [vmem:[#allocation2 + $0x140] sm:$0xff] }
  0x39   : > { %v2787_v63 = vpack.c.bf16 %v400_v61, %v398_v60  ;;  %v399_v1 = vld [vmem:[#allocation2 + $0x150] sm:$0xff]  ;;  %v402_v2 = vld [vmem:[#allocation2 + $0x168] sm:$0xff]  ;;  %v404_v3 = vld [vmem:[#allocation2 + $0x178] sm:$0xff] }
  0x3a   : > { %2762 = vmatpush1.bf16.msra.mxu0 %v2761_v25  ;;  %2934 = vmatpush1.bf16.msra.mxu1 %v2761_v25  ;;  %v2789_v4 = vpack.c.bf16 %v399_v1, %v397_v0  ;;  %v2791_v5 = vpack.c.bf16 %v404_v3, %v402_v2  ;;  %v401_v6 = vld [vmem:[#allocation2 + $0x160] sm:$0xff]  ;;  %v403_v7 = vld [vmem:[#allocation2 + $0x170] sm:$0xff]  ;;  %v406_v8 = vld [vmem:[#allocation2 + $0x188] sm:$0xff] }
  0x3b   : > { %2764 = vmatprep.subr.bf16.mxu0 %v2763_v26  ;;  %2919 = vmatprep.subr.bf16.mxu1 %v2763_v26  ;;  %v408_v9 = vld [vmem:[#allocation2 + $0x198] sm:$0xff]  ;;  %v2793_v10 = vpack.c.bf16 %v403_v7, %v401_v6  ;;  %v405_v12 = vld [vmem:[#allocation2 + $0x180] sm:$0xff]  ;;  %v407_v13 = vld [vmem:[#allocation2 + $0x190] sm:$0xff] }
  0x3c   : > { %v2795_v11 = vpack.c.bf16 %v408_v9, %v406_v8  ;;  %v410_v14 = vld [vmem:[#allocation2 + $0x1a8] sm:$0xff]  ;;  %v412_v15 = vld [vmem:[#allocation2 + $0x1b8] sm:$0xff]  ;;  %v2797_v16 = vpack.c.bf16 %v407_v13, %v405_v12  ;;  %v409_v18 = vld [vmem:[#allocation2 + $0x1a0] sm:$0xff] }
  0x3d   : > { %v2799_v17 = vpack.c.bf16 %v412_v15, %v410_v14  ;;  %v411_v19 = vld [vmem:[#allocation2 + $0x1b0] sm:$0xff]  ;;  %v414_v20 = vld [vmem:[#allocation2 + $0x1c8] sm:$0xff]  ;;  %v416_v21 = vld [vmem:[#allocation2 + $0x1d8] sm:$0xff] }
  0x3e   : > { %2766 = vmatpush1.bf16.msra.mxu0 %v2765_v31  ;;  %2935 = vmatpush1.bf16.msra.mxu1 %v2765_v31  ;;  %v2801_v22 = vpack.c.bf16 %v411_v19, %v409_v18  ;;  %v2803_v23 = vpack.c.bf16 %v416_v21, %v414_v20  ;;  %v413_v24 = vld [vmem:[#allocation2 + $0x1c0] sm:$0xff]  ;;  %v415_v25 = vld [vmem:[#allocation2 + $0x1d0] sm:$0xff]  ;;  %v418_v26 = vld [vmem:[#allocation2 + $0x1e8] sm:$0xff] }
  0x3f   : > { %2768 = vmatprep.subr.bf16.mxu0 %v2767_v32  ;;  %2920 = vmatprep.subr.bf16.mxu1 %v2767_v32  ;;  %v420_v27 = vld [vmem:[#allocation2 + $0x1f8] sm:$0xff]  ;;  %v2805_v28 = vpack.c.bf16 %v415_v25, %v413_v24  ;;  %v417_v30 = vld [vmem:[#allocation2 + $0x1e0] sm:$0xff]  ;;  %v419_v31 = vld [vmem:[#allocation2 + $0x1f0] sm:$0xff] }
  0x40   : > { %v2807_v29 = vpack.c.bf16 %v420_v27, %v418_v26  ;;  %v350_v32 = vld [vmem:[%s4359_s2 + $0x8] sm:$0xff]  ;;  %v352_v33 = vld [vmem:[%s4359_s2 + $0x18] sm:$0xff]  ;;  %v2809_v34 = vpack.c.bf16 %v419_v31, %v417_v30  ;;  %v349_v36 = vld [vmem:[%s4359_s2] sm:$0xff] }
  0x41   : > { %v2811_v35 = vpack.c.bf16 %v352_v33, %v350_v32  ;;  %v356_v39 = vld [vmem:[%s4359_s2 + $0x38] sm:$0xff]  ;;  %v552_v40 = vld [vmem:[%s3372_s29 + $0x108] sm:$0xff]  ;;  %v519_v41 = vld [vmem:[%s3372_s29] sm:$0xff] }
  0x42   : > { %2770 = vmatpush1.bf16.msra.mxu0 %v2769_v37  ;;  %2936 = vmatpush1.bf16.msra.mxu1 %v2769_v37  ;;  %v351_v37 = vld [vmem:[%s4359_s2 + $0x10] sm:$0xff]  ;;  %v551_v43 = vld [vmem:[%s3372_s29 + $0x100] sm:$0xff]  ;;  %v554_v48 = vld [vmem:[%s3372_s29 + $0x118] sm:$0xff] }
  0x43   : > { %2772 = vmatprep.subr.bf16.mxu0 %v2771_v38  ;;  %2921 = vmatprep.subr.bf16.mxu1 %v2771_v38  ;;  %v354_v38 = vld [vmem:[%s4359_s2 + $0x28] sm:$0xff]  ;;  %v2813_v42 = vpack.c.bf16 %v351_v37, %v349_v36  ;;  %v353_v46 = vld [vmem:[%s4359_s2 + $0x20] sm:$0xff]  ;;  %v355_v47 = vld [vmem:[%s4359_s2 + $0x30] sm:$0xff] }
  0x44   : > { %743 = vmatprep.mubr.f32.mxu1 %v552_v40  ;;  %v521_v49 = vld [vmem:[%s3372_s29 + $0x10] sm:$0xff]  ;;  %v524_v52 = vld [vmem:[%s3372_s29 + $0x28] sm:$0xff]  ;;  %v523_v54 = vld [vmem:[%s3372_s29 + $0x20] sm:$0xff] }
  0x45   : > { %v556_v53 = vld [vmem:[%s3372_s29 + $0x128] sm:$0xff]  ;;  %v555_v55 = vld [vmem:[%s3372_s29 + $0x120] sm:$0xff]  ;;  %v525_v58 = vld [vmem:[%s3372_s29 + $0x30] sm:$0xff] }
  0x46   : > { %2774 = vmatpush1.bf16.msra.mxu0 %v2773_v44  ;;  %2937 = vmatpush1.bf16.msra.mxu1 %v2773_v44  ;;  %v522_v44 = vld [vmem:[%s3372_s29 + $0x18] sm:$0xff]  ;;  %v557_v59 = vld [vmem:[%s3372_s29 + $0x130] sm:$0xff]  ;;  %v528_v60 = vld [vmem:[%s3372_s29 + $0x48] sm:$0xff] }
  0x47   : > { %2776 = vmatprep.subr.bf16.mxu0 %v2775_v45  ;;  %2922 = vmatprep.subr.bf16.mxu1 %v2775_v45  ;;  %v2815_v45 = vpack.c.bf16 %v356_v39, %v354_v38  ;;  %v560_v61 = vld [vmem:[%s3372_s29 + $0x148] sm:$0xff]  ;;  %v530_v0 = vld [vmem:[%s3372_s29 + $0x58] sm:$0xff]  ;;  %v529_v2 = vld [vmem:[%s3372_s29 + $0x50] sm:$0xff] }
  0x48   : > { %v562_v1 = vld [vmem:[%s3372_s29 + $0x158] sm:$0xff]  ;;  %v561_v3 = vld [vmem:[%s3372_s29 + $0x150] sm:$0xff]  ;;  %v531_v6 = vld [vmem:[%s3372_s29 + $0x60] sm:$0xff] }
  0x49   : > { %v563_v7 = vld [vmem:[%s3372_s29 + $0x160] sm:$0xff]  ;;  %v534_v8 = vld [vmem:[%s3372_s29 + $0x78] sm:$0xff]  ;;  %v536_v12 = vld [vmem:[%s3372_s29 + $0x88] sm:$0xff] }
  0x4a   : > { %2778 = vmatpush1.bf16.msra.mxu0 %v2777_v50  ;;  %2938 = vmatpush1.bf16.msra.mxu1 %v2777_v50  ;;  %v2817_v50 = vpack.c.bf16 %v355_v47, %v353_v46  ;;  %v566_v9 = vld [vmem:[%s3372_s29 + $0x178] sm:$0xff]  ;;  %v568_v13 = vld [vmem:[%s3372_s29 + $0x188] sm:$0xff]  ;;  %v535_v14 = vld [vmem:[%s3372_s29 + $0x80] sm:$0xff]  ;;  %v3269_v47 = vmov 0.0  }
  0x4b   : > { %2780 = vmatprep.subr.bf16.mxu0 %v2779_v51  ;;  %2923 = vmatprep.subr.bf16.mxu1 %v2779_v51  ;;  %v553_v51 = vld [vmem:[%s3372_s29 + $0x110] sm:$0xff]  ;;  %v567_v15 = vld [vmem:[%s3372_s29 + $0x180] sm:$0xff]  ;;  %v540_v20 = vld [vmem:[%s3372_s29 + $0xa8] sm:$0xff] }
  0x4c   : > { %v537_v18 = vld [vmem:[%s3372_s29 + $0x90] sm:$0xff]  ;;  %v572_v21 = vld [vmem:[%s3372_s29 + $0x1a8] sm:$0xff]  ;;  %v542_v24 = vld [vmem:[%s3372_s29 + $0xb8] sm:$0xff] }
  0x4d   : > { %v569_v19 = vld [vmem:[%s3372_s29 + $0x190] sm:$0xff]  ;;  %v574_v25 = vld [vmem:[%s3372_s29 + $0x1b8] sm:$0xff]  ;;  %v543_v30 = vld [vmem:[%s3372_s29 + $0xc0] sm:$0xff] }
  0x4e   : > { %2782 = vmatpush1.bf16.msra.mxu0 %v2781_v56  ;;  %2939 = vmatpush1.bf16.msra.mxu1 %v2781_v56  ;;  %v526_v56 = vld [vmem:[%s3372_s29 + $0x38] sm:$0xff]  ;;  %v541_v26 = vld [vmem:[%s3372_s29 + $0xb0] sm:$0xff]  ;;  %v575_v31 = vld [vmem:[%s3372_s29 + $0x1c0] sm:$0xff] }
  0x4f   : > { %2784 = vmatprep.subr.bf16.mxu0 %v2783_v57  ;;  %2924 = vmatprep.subr.bf16.mxu1 %v2783_v57  ;;  %v558_v57 = vld [vmem:[%s3372_s29 + $0x138] sm:$0xff]  ;;  %v573_v27 = vld [vmem:[%s3372_s29 + $0x1b0] sm:$0xff]  ;;  %v548_v36 = vld [vmem:[%s3372_s29 + $0xe8] sm:$0xff] }
  0x50   : > { %v546_v32 = vld [vmem:[%s3372_s29 + $0xd8] sm:$0xff]  ;;  %v580_v37 = vld [vmem:[%s3372_s29 + $0x1e8] sm:$0xff]  ;;  %v547_v38 = vld [vmem:[%s3372_s29 + $0xe0] sm:$0xff] }
  0x51   : > { %v578_v33 = vld [vmem:[%s3372_s29 + $0x1d8] sm:$0xff]  ;;  %v579_v39 = vld [vmem:[%s3372_s29 + $0x1e0] sm:$0xff]  ;;  %v423_v46 = vld [vmem:[%s4362_s5 + $0x10] sm:$0xff] }
  0x52   : > { %2786 = vmatpush1.bf16.msra.mxu0 %v2785_v62  ;;  %2940 = vmatpush1.bf16.msra.mxu1 %v2785_v62  ;;  %v527_v62 = vld [vmem:[%s3372_s29 + $0x40] sm:$0xff]  ;;  %v550_v40 = vld [vmem:[%s3372_s29 + $0xf8] sm:$0xff] }
  0x53   : > { %2788 = vmatprep.subr.bf16.mxu0 %v2787_v63  ;;  %2925 = vmatprep.subr.bf16.mxu1 %v2787_v63  ;;  %v559_v63 = vld [vmem:[%s3372_s29 + $0x140] sm:$0xff] }
  0x56   : > { %2790 = vmatpush1.bf16.msra.mxu0 %v2789_v4  ;;  %2941 = vmatpush1.bf16.msra.mxu1 %v2789_v4  ;;  %v532_v4 = vld [vmem:[%s3372_s29 + $0x68] sm:$0xff] }
  0x57   : > { %2792 = vmatprep.subr.bf16.mxu0 %v2791_v5  ;;  %2926 = vmatprep.subr.bf16.mxu1 %v2791_v5  ;;  %v564_v5 = vld [vmem:[%s3372_s29 + $0x168] sm:$0xff] }
  0x5a   : > { %2794 = vmatpush1.bf16.msra.mxu0 %v2793_v10  ;;  %2942 = vmatpush1.bf16.msra.mxu1 %v2793_v10  ;;  %v533_v10 = vld [vmem:[%s3372_s29 + $0x70] sm:$0xff] }
  0x5b   : > { %2796 = vmatprep.subr.bf16.mxu0 %v2795_v11  ;;  %2927 = vmatprep.subr.bf16.mxu1 %v2795_v11  ;;  %v565_v11 = vld [vmem:[%s3372_s29 + $0x170] sm:$0xff] }
  0x5e   : > { %2798 = vmatpush1.bf16.msra.mxu0 %v2797_v16  ;;  %2943 = vmatpush1.bf16.msra.mxu1 %v2797_v16  ;;  %v538_v16 = vld [vmem:[%s3372_s29 + $0x98] sm:$0xff] }
  0x5f   : > { %2800 = vmatprep.subr.bf16.mxu0 %v2799_v17  ;;  %2928 = vmatprep.subr.bf16.mxu1 %v2799_v17  ;;  %v570_v17 = vld [vmem:[%s3372_s29 + $0x198] sm:$0xff] }
  0x62   : > { %2802 = vmatpush1.bf16.msra.mxu0 %v2801_v22  ;;  %2944 = vmatpush1.bf16.msra.mxu1 %v2801_v22  ;;  %v539_v22 = vld [vmem:[%s3372_s29 + $0xa0] sm:$0xff] }
  0x63   : > { %2804 = vmatprep.subr.bf16.mxu0 %v2803_v23  ;;  %2929 = vmatprep.subr.bf16.mxu1 %v2803_v23  ;;  %v571_v23 = vld [vmem:[%s3372_s29 + $0x1a0] sm:$0xff] }
  0x66   : > { %2806 = vmatpush1.bf16.msra.mxu0 %v2805_v28  ;;  %2945 = vmatpush1.bf16.msra.mxu1 %v2805_v28  ;;  %v544_v28 = vld [vmem:[%s3372_s29 + $0xc8] sm:$0xff] }
  0x67   : > { %2808 = vmatprep.subr.bf16.mxu0 %v2807_v29  ;;  %2930 = vmatprep.subr.bf16.mxu1 %v2807_v29  ;;  %v576_v29 = vld [vmem:[%s3372_s29 + $0x1c8] sm:$0xff] }
  0x6a   : > { %2810 = vmatpush1.bf16.msra.mxu0 %v2809_v34  ;;  %2946 = vmatpush1.bf16.msra.mxu1 %v2809_v34  ;;  %v545_v34 = vld [vmem:[%s3372_s29 + $0xd0] sm:$0xff] }
  0x6b   : > { %2812 = vmatprep.subr.bf16.mxu0 %v2811_v35  ;;  %v577_v35 = vld [vmem:[%s3372_s29 + $0x1d0] sm:$0xff] }
  0x6d   : > { %648 = vmatmul.mubr.f32.vlgmr.msra.gmra.mrb[0].mxu0 %v519_v41  ;;  %744 = vmatmul.mubr.f32.vlgmr.msra.gmra.mrb[0].mxu1 %v551_v43  ;;  %v582_v41 = vld [vmem:[%s3372_s29 + $0x1f8] sm:$0xff]  ;;  %v581_v43 = vld [vmem:[%s3372_s29 + $0x1f0] sm:$0xff] }
  0x6e   : > { %2814 = vmatpush1.bf16.msra.mxu0 %v2813_v42  ;;  %653 = vmatprep.mubr.f32.mxu0 %v522_v44  ;;  %v549_v42 = vld [vmem:[%s3372_s29 + $0xf0] sm:$0xff]  ;;  %v421_v44 = vld [vmem:[%s4362_s5] sm:$0xff] }
  0x6f   : > { %2816 = vmatprep.subr.bf16.mxu0 %v2815_v45  ;;  %749 = vmatprep.mubr.f32.mxu1 %v554_v48  ;;  %v422_v45 = vld [vmem:[%s4362_s5 + $0x8] sm:$0xff]  ;;  %v487_v48 = vld [vmem:[%s3468_s30] sm:$0xff] }
  0x71   : > { %654 = vmatmul.mubr.f32.gmra.mrb[2].mxu0 %v521_v49  ;;  %750 = vmatmul.mubr.f32.gmra.mrb[2].mxu1 %v553_v51  ;;  %v3270_v49 = vmov 0.0|0.0   ;;  %v424_v51 = vld [vmem:[%s4362_s5 + $0x18] sm:$0xff] }
  0x72   : > { %659 = vmatprep.mubr.f32.mxu0 %v524_v52  ;;  %2818 = vmatpush1.bf16.msra.mxu0 %v2817_v50  ;;  %v2820_v50 = vpack.c.bf16 %v422_v45, %v421_v44  ;;  %v2823_v52 = vpack.c.bf16 %v424_v51, %v423_v46  ;;  %v507_v44 = vld [vmem:[%s3468_s30 + $0xa0] sm:$0xff]  ;;  %v450_v46 = vld [vmem:[%s4362_s5 + $0xe8] sm:$0xff]  ;;  %v451_v51 = vld [vmem:[%s4362_s5 + $0xf0] sm:$0xff] }
  0x73   : > { %755 = vmatprep.mubr.f32.mxu1 %v556_v53  ;;  %2819 = vmatprep.subr.bf16.mxu1 %v3270_v49  ;;  %v425_v53 = vld [vmem:[%s4362_s5 + $0x20] sm:$0xff] }
  0x74   : > { %2867 = vmatprep.subr.bf16.mxu0 %v3270_v49  ;;  %2821 = vmatpush1.bf16.msra.mxu1 %v2820_v50  ;;  %v449_v45 = vld [vmem:[%s4362_s5 + $0xe0] sm:$0xff] }
  0x75   : > { %660 = vmatmul.mubr.f32.gmra.mrb[4].mxu0 %v523_v54  ;;  %756 = vmatmul.mubr.f32.gmra.mrb[4].mxu1 %v555_v55  ;;  %v426_v54 = vld [vmem:[%s4362_s5 + $0x28] sm:$0xff]  ;;  %v2862_v50 = vpack.c.bf16 %v450_v46, %v449_v45 }
  0x76   : > { %665 = vmatprep.mubr.f32.mxu0 %v526_v56  ;;  %761 = vmatprep.mubr.f32.mxu1 %v558_v57  ;;  %v488_v55 = vld [vmem:[%s3468_s30 + $0x8] sm:$0xff]  ;;  %v2826_v56 = vpack.c.bf16 %v426_v54, %v425_v53  ;;  %v427_v57 = vld [vmem:[%s4362_s5 + $0x30] sm:$0xff] }
  0x77   : > { %2822 = vmatprep.subr.bf16.mxu1 %v3270_v49  ;;  %v509_v53 = vld [vmem:[%s3468_s30 + $0xb0] sm:$0xff] }
  0x78   : > { %2824 = vmatpush1.bf16.msra.mxu1 %v2823_v52  ;;  %v452_v52 = vld [vmem:[%s4362_s5 + $0xf8] sm:$0xff] }
  0x79   : > { %666 = vmatmul.mubr.f32.gmra.mrb[6].mxu0 %v525_v58  ;;  %762 = vmatmul.mubr.f32.gmra.mrb[6].mxu1 %v557_v59  ;;  %v428_v58 = vld [vmem:[%s4362_s5 + $0x38] sm:$0xff]  ;;  %v489_v59 = vld [vmem:[%s3468_s30 + $0x10] sm:$0xff]  ;;  %v2865_v54 = vpack.c.bf16 %v452_v52, %v451_v51 }
  0x7a   : > { %671 = vmatprep.mubr.f32.mxu0 %v528_v60  ;;  %767 = vmatprep.mubr.f32.mxu1 %v560_v61  ;;  %v2829_v60 = vpack.c.bf16 %v428_v58, %v427_v57  ;;  %v429_v61 = vld [vmem:[%s4362_s5 + $0x40] sm:$0xff]  ;;  %v512_v57 = vld [vmem:[%s3468_s30 + $0xc8] sm:$0xff]  ;;  %v513_v58 = vld [vmem:[%s3468_s30 + $0xd0] sm:$0xff] }
  0x7b   : > { %2825 = vmatprep.subr.bf16.mxu1 %v3270_v49 }
  0x7c   : > { %2827 = vmatpush1.bf16.msra.mxu1 %v2826_v56  ;;  %v511_v56 = vld [vmem:[%s3468_s30 + $0xc0] sm:$0xff] }
  0x7d   : > { %672 = vmatmul.mubr.f32.gmra.mrb[8].mxu0 %v527_v62  ;;  %768 = vmatmul.mubr.f32.gmra.mrb[8].mxu1 %v559_v63  ;;  %v430_v62 = vld [vmem:[%s4362_s5 + $0x48] sm:$0xff]  ;;  %v490_v63 = vld [vmem:[%s3468_s30 + $0x18] sm:$0xff] }
  0x7e   : > { %677 = vmatprep.mubr.f32.mxu0 %v530_v0  ;;  %773 = vmatprep.mubr.f32.mxu1 %v562_v1  ;;  %v2832_v0 = vpack.c.bf16 %v430_v62, %v429_v61  ;;  %v431_v1 = vld [vmem:[%s4362_s5 + $0x50] sm:$0xff]  ;;  %v516_v61 = vld [vmem:[%s3468_s30 + $0xe8] sm:$0xff] }
  0x7f   : > { %2828 = vmatprep.subr.bf16.mxu1 %v3270_v49  ;;  %v517_v62 = vld [vmem:[%s3468_s30 + $0xf0] sm:$0xff] }
  0x80   : > { %2830 = vmatpush1.bf16.msra.mxu1 %v2829_v60  ;;  %v515_v60 = vld [vmem:[%s3468_s30 + $0xe0] sm:$0xff] }
  0x81   : > { %678 = vmatmul.mubr.f32.gmra.mrb[10].mxu0 %v529_v2  ;;  %774 = vmatmul.mubr.f32.gmra.mrb[10].mxu1 %v561_v3  ;;  %v432_v2 = vld [vmem:[%s4362_s5 + $0x58] sm:$0xff]  ;;  %v491_v3 = vld [vmem:[%s3468_s30 + $0x20] sm:$0xff] }
  0x82   : > { %683 = vmatprep.mubr.f32.mxu0 %v532_v4  ;;  %779 = vmatprep.mubr.f32.mxu1 %v564_v5  ;;  %v2835_v4 = vpack.c.bf16 %v432_v2, %v431_v1  ;;  %v433_v5 = vld [vmem:[%s4362_s5 + $0x60] sm:$0xff] }
  0x83   : > { %2831 = vmatprep.subr.bf16.mxu1 %v3270_v49 }
  0x84   : > { %2833 = vmatpush1.bf16.msra.mxu1 %v2832_v0 }
  0x85   : > { %684 = vmatmul.mubr.f32.gmra.mrb[12].mxu0 %v531_v6  ;;  %780 = vmatmul.mubr.f32.gmra.mrb[12].mxu1 %v563_v7  ;;  %v434_v6 = vld [vmem:[%s4362_s5 + $0x68] sm:$0xff] }
  0x86   : > { %689 = vmatprep.mubr.f32.mxu0 %v534_v8  ;;  %785 = vmatprep.mubr.f32.mxu1 %v566_v9  ;;  %v492_v7 = vld [vmem:[%s3468_s30 + $0x28] sm:$0xff]  ;;  %v2838_v8 = vpack.c.bf16 %v434_v6, %v433_v5  ;;  %v435_v9 = vld [vmem:[%s4362_s5 + $0x70] sm:$0xff] }
  0x87   : > { %2834 = vmatprep.subr.bf16.mxu1 %v3270_v49 }
  0x88   : > { %2836 = vmatpush1.bf16.msra.mxu1 %v2835_v4 }
  0x89   : > { %690 = vmatmul.mubr.f32.gmra.mrb[14].mxu0 %v533_v10  ;;  %786 = vmatmul.mubr.f32.gmra.mrb[14].mxu1 %v565_v11  ;;  %v436_v10 = vld [vmem:[%s4362_s5 + $0x78] sm:$0xff]  ;;  %v493_v11 = vld [vmem:[%s3468_s30 + $0x30] sm:$0xff] }
  0x8a   : > { %695 = vmatprep.mubr.f32.mxu0 %v536_v12  ;;  %791 = vmatprep.mubr.f32.mxu1 %v568_v13  ;;  %v2841_v12 = vpack.c.bf16 %v436_v10, %v435_v9  ;;  %v437_v13 = vld [vmem:[%s4362_s5 + $0x80] sm:$0xff] }
  0x8b   : > { %2837 = vmatprep.subr.bf16.mxu1 %v3270_v49 }
  0x8c   : > { %2839 = vmatpush1.bf16.msra.mxu1 %v2838_v8 }
  0x8d   : > { %696 = vmatmul.mubr.f32.gmra.mrb[16].mxu0 %v535_v14  ;;  %792 = vmatmul.mubr.f32.gmra.mrb[16].mxu1 %v567_v15  ;;  %v438_v14 = vld [vmem:[%s4362_s5 + $0x88] sm:$0xff]  ;;  %v494_v15 = vld [vmem:[%s3468_s30 + $0x38] sm:$0xff] }
  0x8e   : > { %701 = vmatprep.mubr.f32.mxu0 %v538_v16  ;;  %797 = vmatprep.mubr.f32.mxu1 %v570_v17  ;;  %v2844_v16 = vpack.c.bf16 %v438_v14, %v437_v13  ;;  %v439_v17 = vld [vmem:[%s4362_s5 + $0x90] sm:$0xff] }
  0x8f   : > { %2840 = vmatprep.subr.bf16.mxu1 %v3270_v49 }
  0x90   : > { %2842 = vmatpush1.bf16.msra.mxu1 %v2841_v12 }
  0x91   : > { %702 = vmatmul.mubr.f32.gmra.mrb[18].mxu0 %v537_v18  ;;  %798 = vmatmul.mubr.f32.gmra.mrb[18].mxu1 %v569_v19  ;;  %v440_v18 = vld [vmem:[%s4362_s5 + $0x98] sm:$0xff]  ;;  %v495_v19 = vld [vmem:[%s3468_s30 + $0x40] sm:$0xff] }
  0x92   : > { %707 = vmatprep.mubr.f32.mxu0 %v540_v20  ;;  %803 = vmatprep.mubr.f32.mxu1 %v572_v21  ;;  %v2847_v20 = vpack.c.bf16 %v440_v18, %v439_v17  ;;  %v441_v21 = vld [vmem:[%s4362_s5 + $0xa0] sm:$0xff] }
  0x93   : > { %2843 = vmatprep.subr.bf16.mxu1 %v3270_v49 }
  0x94   : > { %2845 = vmatpush1.bf16.msra.mxu1 %v2844_v16 }
  0x95   : > { %708 = vmatmul.mubr.f32.gmra.mrb[20].mxu0 %v539_v22  ;;  %804 = vmatmul.mubr.f32.gmra.mrb[20].mxu1 %v571_v23  ;;  %v442_v22 = vld [vmem:[%s4362_s5 + $0xa8] sm:$0xff] }
  0x96   : > { %713 = vmatprep.mubr.f32.mxu0 %v542_v24  ;;  %809 = vmatprep.mubr.f32.mxu1 %v574_v25  ;;  %v496_v23 = vld [vmem:[%s3468_s30 + $0x48] sm:$0xff]  ;;  %v2850_v24 = vpack.c.bf16 %v442_v22, %v441_v21  ;;  %v443_v25 = vld [vmem:[%s4362_s5 + $0xb0] sm:$0xff] }
  0x97   : > { %2846 = vmatprep.subr.bf16.mxu1 %v3270_v49 }
  0x98   : > { %2848 = vmatpush1.bf16.msra.mxu1 %v2847_v20 }
  0x99   : > { %714 = vmatmul.mubr.f32.gmra.mrb[22].mxu0 %v541_v26  ;;  %810 = vmatmul.mubr.f32.gmra.mrb[22].mxu1 %v573_v27  ;;  %v444_v26 = vld [vmem:[%s4362_s5 + $0xb8] sm:$0xff]  ;;  %v497_v27 = vld [vmem:[%s3468_s30 + $0x50] sm:$0xff] }
  0x9a   : > { %719 = vmatprep.mubr.f32.mxu0 %v544_v28  ;;  %815 = vmatprep.mubr.f32.mxu1 %v576_v29  ;;  %v2853_v28 = vpack.c.bf16 %v444_v26, %v443_v25  ;;  %v445_v29 = vld [vmem:[%s4362_s5 + $0xc0] sm:$0xff]  ;;  %v1196_v25 = vlaneseq }
  0x9b   : > { %2849 = vmatprep.subr.bf16.mxu1 %v3270_v49 }
  0x9c   : > { %2851 = vmatpush1.bf16.msra.mxu1 %v2850_v24 }
  0x9d   : > { %720 = vmatmul.mubr.f32.gmra.mrb[24].mxu0 %v543_v30  ;;  %816 = vmatmul.mubr.f32.gmra.mrb[24].mxu1 %v575_v31  ;;  %v446_v30 = vld [vmem:[%s4362_s5 + $0xc8] sm:$0xff]  ;;  %v498_v31 = vld [vmem:[%s3468_s30 + $0x58] sm:$0xff] }
  0x9e   : > { %725 = vmatprep.mubr.f32.mxu0 %v546_v32  ;;  %821 = vmatprep.mubr.f32.mxu1 %v578_v33  ;;  %v2856_v32 = vpack.c.bf16 %v446_v30, %v445_v29  ;;  %v447_v33 = vld [vmem:[%s4362_s5 + $0xd0] sm:$0xff] }
  0x9f   : > { %2852 = vmatprep.subr.bf16.mxu1 %v3270_v49 }
  0xa0   : > { %2854 = vmatpush1.bf16.msra.mxu1 %v2853_v28  ;;  %v1197_v28 = vshrl.u32 %v1196_v25, 7 }
  0xa1   : > { %726 = vmatmul.mubr.f32.gmra.mrb[26].mxu0 %v545_v34  ;;  %822 = vmatmul.mubr.f32.gmra.mrb[26].mxu1 %v577_v35  ;;  %v448_v34 = vld [vmem:[%s4362_s5 + $0xd8] sm:$0xff]  ;;  %v499_v35 = vld [vmem:[%s3468_s30 + $0x60] sm:$0xff] }
  0xa2   : > { %731 = vmatprep.mubr.f32.mxu0 %v548_v36  ;;  %827 = vmatprep.mubr.f32.mxu1 %v580_v37  ;;  %v2859_v36 = vpack.c.bf16 %v448_v34, %v447_v33  ;;  %v500_v37 = vld [vmem:[%s3468_s30 + $0x68] sm:$0xff]  ;;  %v1194_v33 = vld [vmem:[%s4361_s4] sm:$0x3]  ;;  %v1202_v34 = vsub.s32 1, %v1197_v28 }
  0xa3   : > { %2855 = vmatprep.subr.bf16.mxu1 %v3270_v49 }
  0xa4   : > { %2857 = vmatpush1.bf16.msra.mxu1 %v2856_v32 }
  0xa5   : > { %732 = vmatmul.mubr.f32.gmra.mrb[28].mxu0 %v547_v38  ;;  %828 = vmatmul.mubr.f32.gmra.mrb[28].mxu1 %v579_v39  ;;  %v501_v38 = vld [vmem:[%s3468_s30 + $0x70] sm:$0xff]  ;;  %v502_v39 = vld [vmem:[%s3468_s30 + $0x78] sm:$0xff] }
  0xa6   : > { %737 = vmatprep.mubr.f32.mxu0 %v550_v40  ;;  %833 = vmatprep.mubr.f32.mxu1 %v582_v41  ;;  %v503_v40 = vld [vmem:[%s3468_s30 + $0x80] sm:$0xff]  ;;  %v504_v41 = vld [vmem:[%s3468_s30 + $0x88] sm:$0xff] }
  0xa7   : > { %2858 = vmatprep.subr.bf16.mxu1 %v3270_v49 }
  0xa8   : > { %2860 = vmatpush1.bf16.msra.mxu1 %v2859_v36 }
  0xa9   : > { %738 = vmatmul.mubr.f32.gmra.mrb[30].mxu0 %v549_v42  ;;  %834 = vmatmul.mubr.f32.gmra.mrb[30].mxu1 %v581_v43  ;;  %v505_v42 = vld [vmem:[%s3468_s30 + $0x90] sm:$0xff]  ;;  %v506_v43 = vld [vmem:[%s3468_s30 + $0x98] sm:$0xff] }
  0xaa   : > { %1001 = vmatprep.mubr.f32.mxu0 %v3269_v47  ;;  %2861 = vmatprep.subr.bf16.mxu1 %v3270_v49 }
  0xac   : > { %2863 = vmatpush1.bf16.msra.mxu1 %v2862_v50 }
  0xad   : > { %2680 = vmatmul.mubr.msk.f32.vlgmr.msra.gmra.mrb[0].mxu0 %vm840_vm0, %v487_v48  ;;  %v508_v48 = vld [vmem:[%s3468_s30 + $0xa8] sm:$0xff]  ;;  %2864 = vmatprep.subr.bf16.mxu1 %v3270_v49 }
  0xae   : > { %1007 = vmatprep.mubr.f32.mxu0 %v3269_v47 }
  0xb0   : > { %2866 = vmatpush1.bf16.msra.mxu1 %v2865_v54 }
  0xb1   : > { %2681 = vmatmul.mubr.msk.f32.gmra.mrb[2].mxu0 %vm840_vm0, %v488_v55  ;;  %v510_v55 = vld [vmem:[%s3468_s30 + $0xb8] sm:$0xff] }
  0xb2   : > { %1013 = vmatprep.mubr.f32.mxu0 %v3269_v47 }
  0xb5   : > { %2682 = vmatmul.mubr.msk.f32.gmra.mrb[4].mxu0 %vm840_vm0, %v489_v59  ;;  %v514_v59 = vld [vmem:[%s3468_s30 + $0xd8] sm:$0xff] }
  0xb6   : > { %1019 = vmatprep.mubr.f32.mxu0 %v3269_v47 }
  0xb9   : > { %2683 = vmatmul.mubr.msk.f32.gmra.mrb[6].mxu0 %vm840_vm0, %v490_v63  ;;  %v518_v63 = vld [vmem:[%s3468_s30 + $0xf8] sm:$0xff]  ;;  %s4288_s30 = scalar_lea.vmem %s4365_s8, %s2674_s25 }
  0xba   : > { %1025 = vmatprep.mubr.f32.mxu0 %v3269_v47 }
  0xbd   : > { %2684 = vmatmul.mubr.msk.f32.gmra.mrb[8].mxu0 %vm840_vm0, %v491_v3 }
  0xbe   : > { %1031 = vmatprep.mubr.f32.mxu0 %v3269_v47 }
  0xc1   : > { %2685 = vmatmul.mubr.msk.f32.gmra.mrb[10].mxu0 %vm840_vm0, %v492_v7 }
  0xc2   : > { %1037 = vmatprep.mubr.f32.mxu0 %v3269_v47 }
  0xc5   : > { %2686 = vmatmul.mubr.msk.f32.gmra.mrb[12].mxu0 %vm840_vm0, %v493_v11 }
  0xc6   : > { %1043 = vmatprep.mubr.f32.mxu0 %v3269_v47 }
  0xc9   : > { %2687 = vmatmul.mubr.msk.f32.gmra.mrb[14].mxu0 %vm840_vm0, %v494_v15 }
  0xca   : > { %1049 = vmatprep.mubr.f32.mxu0 %v3269_v47 }
  0xcd   : > { %2688 = vmatmul.mubr.msk.f32.gmra.mrb[16].mxu0 %vm840_vm0, %v495_v19 }
  0xce   : > { %1055 = vmatprep.mubr.f32.mxu0 %v3269_v47 }
  0xd1   : > { %2689 = vmatmul.mubr.msk.f32.gmra.mrb[18].mxu0 %vm840_vm0, %v496_v23 }
  0xd2   : > { %1061 = vmatprep.mubr.f32.mxu0 %v3269_v47 }
  0xd5   : > { %2690 = vmatmul.mubr.msk.f32.gmra.mrb[20].mxu0 %vm840_vm0, %v497_v27 }
  0xd6   : > { %1067 = vmatprep.mubr.f32.mxu0 %v3269_v47 }
  0xd9   : > { %2691 = vmatmul.mubr.msk.f32.gmra.mrb[22].mxu0 %vm840_vm0, %v498_v31  ;;  %v1198_v31 = vsub.s32 0, %v1197_v28 }
  0xda   : > { %1073 = vmatprep.mubr.f32.mxu0 %v3269_v47 }
  0xdb   : > { %v3744_v36 = vrot.slane %v1194_v33, %v1198_v31 }
  0xdd   : > { %2692 = vmatmul.mubr.msk.f32.gmra.mrb[24].mxu0 %vm840_vm0, %v499_v35 }
  0xde   : > { %1079 = vmatprep.mubr.f32.mxu0 %v3269_v47 }
  0xe1   : > { %2693 = vmatmul.mubr.msk.f32.gmra.mrb[26].mxu0 %vm840_vm0, %v500_v37 }
  0xe2   : > { %1085 = vmatprep.mubr.f32.mxu0 %v3269_v47 }
  0xe5   : > { %2694 = vmatmul.mubr.msk.f32.gmra.mrb[28].mxu0 %vm840_vm0, %v501_v38  ;;  %v3748_v38 = vrot.slane %v1194_v33, %v1202_v34 }
  0xe6   : > { %1091 = vmatprep.mubr.f32.mxu0 %v3269_v47 }
  0xe9   : > { %2695 = vmatmul.mubr.msk.f32.gmra.mrb[30].mxu0 %vm840_vm0, %v502_v39 }
  0xea   : > { %1097 = vmatprep.mubr.f32.mxu0 %v3269_v47 }
  0xed   : > { %2696 = vmatmul.mubr.msk.f32.gmra.mrb[32].mxu0 %vm840_vm0, %v503_v40 }
  0xee   : > { %1103 = vmatprep.mubr.f32.mxu0 %v3269_v47 }
  0xf1   : > { %2697 = vmatmul.mubr.msk.f32.gmra.mrb[34].mxu0 %vm840_vm0, %v504_v41 }
  0xf2   : > { %1109 = vmatprep.mubr.f32.mxu0 %v3269_v47 }
  0xf5   : > { %2698 = vmatmul.mubr.msk.f32.gmra.mrb[36].mxu0 %vm840_vm0, %v505_v42 }
  0xf6   : > { %1115 = vmatprep.mubr.f32.mxu0 %v3269_v47 }
  0xf9   : > { %2699 = vmatmul.mubr.msk.f32.gmra.mrb[38].mxu0 %vm840_vm0, %v506_v43 }
  0xfa   : > { %1121 = vmatprep.mubr.f32.mxu0 %v3269_v47 }
  0xfd   : > { %2700 = vmatmul.mubr.msk.f32.gmra.mrb[40].mxu0 %vm840_vm0, %v507_v44 }
  0xfe   : > { %1127 = vmatprep.mubr.f32.mxu0 %v3269_v47 }
 0x101   : > { %2701 = vmatmul.mubr.msk.f32.gmra.mrb[42].mxu0 %vm840_vm0, %v508_v48 }
 0x102   : > { %1133 = vmatprep.mubr.f32.mxu0 %v3269_v47 }
 0x105   : > { %2702 = vmatmul.mubr.msk.f32.gmra.mrb[44].mxu0 %vm840_vm0, %v509_v53 }
 0x106   : > { %1139 = vmatprep.mubr.f32.mxu0 %v3269_v47 }
 0x109   : > { %2703 = vmatmul.mubr.msk.f32.gmra.mrb[46].mxu0 %vm840_vm0, %v510_v55 }
 0x10a   : > { %1145 = vmatprep.mubr.f32.mxu0 %v3269_v47 }
 0x10d   : > { %2704 = vmatmul.mubr.msk.f32.gmra.mrb[48].mxu0 %vm840_vm0, %v511_v56 }
 0x10e   : > { %1151 = vmatprep.mubr.f32.mxu0 %v3269_v47 }
 0x111   : > { %2705 = vmatmul.mubr.msk.f32.gmra.mrb[50].mxu0 %vm840_vm0, %v512_v57 }
 0x112   : > { %1157 = vmatprep.mubr.f32.mxu0 %v3269_v47 }
 0x115   : > { %2706 = vmatmul.mubr.msk.f32.gmra.mrb[52].mxu0 %vm840_vm0, %v513_v58 }
 0x116   : > { %1163 = vmatprep.mubr.f32.mxu0 %v3269_v47 }
 0x119   : > { %2707 = vmatmul.mubr.msk.f32.gmra.mrb[54].mxu0 %vm840_vm0, %v514_v59 }
 0x11a   : > { %1169 = vmatprep.mubr.f32.mxu0 %v3269_v47 }
 0x11d   : > { %2708 = vmatmul.mubr.msk.f32.gmra.mrb[56].mxu0 %vm840_vm0, %v515_v60 }
 0x11e   : > { %1175 = vmatprep.mubr.f32.mxu0 %v3269_v47 }
 0x121   : > { %2709 = vmatmul.mubr.msk.f32.gmra.mrb[58].mxu0 %vm840_vm0, %v516_v61 }
 0x122   : > { %1181 = vmatprep.mubr.f32.mxu0 %v3269_v47 }
 0x125   : > { %2710 = vmatmul.mubr.msk.f32.gmra.mrb[60].mxu0 %vm840_vm0, %v517_v62 }
 0x126   : > { %1187 = vmatprep.mubr.f32.mxu0 %v3269_v47 }
 0x129   : > { %2711 = vmatmul.mubr.msk.f32.gmra.mrb[62].mxu0 %vm840_vm0, %v518_v63 }
 0x140   : > { %v3679_v0 = vpop.f32.mrb[0].mxu1 }
 0x141   : > { %v3681_v1 = vpop.f32.mrb[1].mxu1 }
 0x144   : > { %v3683_v2 = vpop.f32.mrb[2].mxu1 }
 0x145   : > { %v3685_v3 = vpop.f32.mrb[3].mxu1 }
 0x148   : > { %v3687_v4 = vpop.f32.mrb[4].mxu1 }
 0x149   : > { %v3689_v5 = vpop.f32.mrb[5].mxu1 }
 0x14c   : > { %v3691_v6 = vpop.f32.mrb[6].mxu1 }
 0x14d   : > { %v3693_v7 = vpop.f32.mrb[7].mxu1 }
 0x150   : > { %v3695_v8 = vpop.f32.mrb[8].mxu1 }
 0x151   : > { %v3697_v9 = vpop.f32.mrb[9].mxu1 }
 0x154   : > { %v3699_v10 = vpop.f32.mrb[10].mxu1 }
 0x155   : > { %v3701_v11 = vpop.f32.mrb[11].mxu1 }
 0x158   : > { %v3703_v12 = vpop.f32.mrb[12].mxu1 }
 0x159   : > { %v3705_v13 = vpop.f32.mrb[13].mxu1 }
 0x15c   : > { %v3707_v14 = vpop.f32.mrb[14].mxu1 }
 0x15d   : > { %v3709_v15 = vpop.f32.mrb[15].mxu1 }
 0x160   : > { %v3711_v16 = vpop.f32.mrb[16].mxu1 }
 0x161   : > { %v3713_v17 = vpop.f32.mrb[17].mxu1 }
 0x164   : > { %v3715_v18 = vpop.f32.mrb[18].mxu1 }
 0x165   : > { %v3717_v19 = vpop.f32.mrb[19].mxu1 }
 0x168   : > { %v3719_v20 = vpop.f32.mrb[20].mxu1 }
 0x169   : > { %v3721_v21 = vpop.f32.mrb[21].mxu1 }
 0x16c   : > { %v3723_v22 = vpop.f32.mrb[22].mxu1 }
 0x16d   : > { %v3725_v23 = vpop.f32.mrb[23].mxu1 }
 0x170   : > { %v3727_v24 = vpop.f32.mrb[24].mxu1 }
 0x171   : > { %v3729_v26 = vpop.f32.mrb[25].mxu1 }
 0x174   : > { %v3731_v27 = vpop.f32.mrb[26].mxu1 }
 0x175   : > { %v3733_v29 = vpop.f32.mrb[27].mxu1 }
 0x178   : > { %v3735_v30 = vpop.f32.mrb[28].mxu1 }
 0x179   : > { %v3737_v32 = vpop.f32.mrb[29].mxu1 }
 0x17c   : > { %v3742_v35 = vpop.f32.mrb[30].mxu1 }
 0x17d   : > { %v3746_v37 = vpop.f32.mrb[31].mxu1 }
 0x180   : > { %v1003_v39 = vpop.f32.mrb[0].mxu0 }
 0x181   : > { %v1206_v40 = vadd.f32 %v3744_v36, %v1003_v39  ;;  %v1005_v41 = vpop.f32.mrb[1].mxu0 }
 0x182   : > { %v1207_v42 = vadd.f32 %v3748_v38, %v1005_v41 }
 0x183   : > { %v1270_v45 = vmax.f32 %v1206_v40, 0.0 }
 0x184   : > { %v1271_v43 = vmax.f32 %v1207_v42, 0.0  ;;  %v1009_v44 = vpop.f32.mrb[2].mxu0 }
 0x185   : > { %v1208_v46 = vadd.f32 %v3744_v36, %v1009_v44  ;;  %v1011_v48 = vpop.f32.mrb[3].mxu0 }
 0x186   : > { %v1209_v50 = vadd.f32 %v3748_v38, %v1011_v48  ;;  %1398 = vmatprep.mubr.f32.mxu1 %v1271_v43 }
 0x187   : > { %1399 = vmatmul.mubr.f32.vlgmr.msra.gmra.mrb[32].mxu1 %v1270_v45  ;;  %v1272_v53 = vmax.f32 %v1208_v46, 0.0 }
 0x188   : > { %v1273_v51 = vmax.f32 %v1209_v50, 0.0  ;;  %v1015_v52 = vpop.f32.mrb[4].mxu0 }
 0x189   : > { %v1210_v54 = vadd.f32 %v3744_v36, %v1015_v52  ;;  %v1017_v55 = vpop.f32.mrb[5].mxu0 }
 0x18a   : > { %v1211_v56 = vadd.f32 %v3748_v38, %v1017_v55  ;;  %1403 = vmatprep.mubr.f32.mxu1 %v1273_v51 }
 0x18b   : > { %1404 = vmatmul.mubr.f32.gmra.mrb[34].mxu1 %v1272_v53  ;;  %v1274_v59 = vmax.f32 %v1210_v54, 0.0 }
 0x18c   : > { %v1275_v57 = vmax.f32 %v1211_v56, 0.0  ;;  %v1021_v58 = vpop.f32.mrb[6].mxu0 }
 0x18d   : > { %v1212_v60 = vadd.f32 %v3744_v36, %v1021_v58  ;;  %v1023_v61 = vpop.f32.mrb[7].mxu0 }
 0x18e   : > { %v1213_v62 = vadd.f32 %v3748_v38, %v1023_v61  ;;  %1408 = vmatprep.mubr.f32.mxu1 %v1275_v57 }
 0x18f   : > { %1409 = vmatmul.mubr.f32.gmra.mrb[36].mxu1 %v1274_v59  ;;  %v1276_v28 = vmax.f32 %v1212_v60, 0.0 }
 0x190   : > { %v1277_v63 = vmax.f32 %v1213_v62, 0.0  ;;  %v1027_v25 = vpop.f32.mrb[8].mxu0 }
 0x191   : > { %v1214_v31 = vadd.f32 %v3744_v36, %v1027_v25  ;;  %v1029_v33 = vpop.f32.mrb[9].mxu0 }
 0x192   : > { %v1215_v34 = vadd.f32 %v3748_v38, %v1029_v33  ;;  %1413 = vmatprep.mubr.f32.mxu1 %v1277_v63 }
 0x193   : > { %1414 = vmatmul.mubr.f32.gmra.mrb[38].mxu1 %v1276_v28  ;;  %v1278_v41 = vmax.f32 %v1214_v31, 0.0 }
 0x194   : > { %v1279_v39 = vmax.f32 %v1215_v34, 0.0  ;;  %v1033_v40 = vpop.f32.mrb[10].mxu0 }
 0x195   : > { %v1216_v42 = vadd.f32 %v3744_v36, %v1033_v40  ;;  %v1035_v43 = vpop.f32.mrb[11].mxu0 }
 0x196   : > { %v1217_v44 = vadd.f32 %v3748_v38, %v1035_v43  ;;  %1418 = vmatprep.mubr.f32.mxu1 %v1279_v39 }
 0x197   : > { %1419 = vmatmul.mubr.f32.gmra.mrb[40].mxu1 %v1278_v41  ;;  %v1280_v48 = vmax.f32 %v1216_v42, 0.0 }
 0x198   : > { %v1281_v45 = vmax.f32 %v1217_v44, 0.0  ;;  %v1039_v46 = vpop.f32.mrb[12].mxu0 }
 0x199   : > { %v1218_v50 = vadd.f32 %v3744_v36, %v1039_v46  ;;  %v1041_v51 = vpop.f32.mrb[13].mxu0 }
 0x19a   : > { %v1219_v52 = vadd.f32 %v3748_v38, %v1041_v51  ;;  %1423 = vmatprep.mubr.f32.mxu1 %v1281_v45 }
 0x19b   : > { %1424 = vmatmul.mubr.f32.gmra.mrb[42].mxu1 %v1280_v48  ;;  %v1282_v55 = vmax.f32 %v1218_v50, 0.0 }
 0x19c   : > { %v1283_v53 = vmax.f32 %v1219_v52, 0.0  ;;  %v1045_v54 = vpop.f32.mrb[14].mxu0 }
 0x19d   : > { %v1220_v56 = vadd.f32 %v3744_v36, %v1045_v54  ;;  %v1047_v57 = vpop.f32.mrb[15].mxu0 }
 0x19e   : > { %v1221_v58 = vadd.f32 %v3748_v38, %v1047_v57  ;;  %1428 = vmatprep.mubr.f32.mxu1 %v1283_v53 }
 0x19f   : > { %1429 = vmatmul.mubr.f32.gmra.mrb[44].mxu1 %v1282_v55  ;;  %v1284_v61 = vmax.f32 %v1220_v56, 0.0 }
 0x1a0   : > { %v1285_v59 = vmax.f32 %v1221_v58, 0.0  ;;  %v1051_v60 = vpop.f32.mrb[16].mxu0 }
 0x1a1   : > { %v1222_v62 = vadd.f32 %v3744_v36, %v1051_v60  ;;  %v1053_v63 = vpop.f32.mrb[17].mxu0 }
 0x1a2   : > { %v1223_v25 = vadd.f32 %v3748_v38, %v1053_v63  ;;  %1433 = vmatprep.mubr.f32.mxu1 %v1285_v59 }
 0x1a3   : > { %1434 = vmatmul.mubr.f32.gmra.mrb[46].mxu1 %v1284_v61  ;;  %v1286_v33 = vmax.f32 %v1222_v62, 0.0 }
 0x1a4   : > { %v1287_v28 = vmax.f32 %v1223_v25, 0.0  ;;  %v1057_v31 = vpop.f32.mrb[18].mxu0 }
 0x1a5   : > { %v1224_v34 = vadd.f32 %v3744_v36, %v1057_v31  ;;  %v1059_v39 = vpop.f32.mrb[19].mxu0 }
 0x1a6   : > { %v1225_v40 = vadd.f32 %v3748_v38, %v1059_v39  ;;  %1438 = vmatprep.mubr.f32.mxu1 %v1287_v28 }
 0x1a7   : > { %1439 = vmatmul.mubr.f32.gmra.mrb[48].mxu1 %v1286_v33  ;;  %v1288_v43 = vmax.f32 %v1224_v34, 0.0 }
 0x1a8   : > { %v1289_v41 = vmax.f32 %v1225_v40, 0.0  ;;  %v1063_v42 = vpop.f32.mrb[20].mxu0 }
 0x1a9   : > { %v1226_v44 = vadd.f32 %v3744_v36, %v1063_v42  ;;  %v1065_v45 = vpop.f32.mrb[21].mxu0 }
 0x1aa   : > { %v1227_v46 = vadd.f32 %v3748_v38, %v1065_v45  ;;  %1443 = vmatprep.mubr.f32.mxu1 %v1289_v41 }
 0x1ab   : > { %1444 = vmatmul.mubr.f32.gmra.mrb[50].mxu1 %v1288_v43  ;;  %v1290_v51 = vmax.f32 %v1226_v44, 0.0 }
 0x1ac   : > { %v1291_v48 = vmax.f32 %v1227_v46, 0.0  ;;  %v1069_v50 = vpop.f32.mrb[22].mxu0 }
 0x1ad   : > { %v1228_v52 = vadd.f32 %v3744_v36, %v1069_v50  ;;  %v1071_v53 = vpop.f32.mrb[23].mxu0 }
 0x1ae   : > { %v1229_v54 = vadd.f32 %v3748_v38, %v1071_v53  ;;  %1448 = vmatprep.mubr.f32.mxu1 %v1291_v48 }
 0x1af   : > { %1449 = vmatmul.mubr.f32.gmra.mrb[52].mxu1 %v1290_v51  ;;  %v1292_v57 = vmax.f32 %v1228_v52, 0.0 }
 0x1b0   : > { %v1293_v55 = vmax.f32 %v1229_v54, 0.0  ;;  %v1075_v56 = vpop.f32.mrb[24].mxu0 }
 0x1b1   : > { %v1230_v58 = vadd.f32 %v3744_v36, %v1075_v56  ;;  %v1077_v59 = vpop.f32.mrb[25].mxu0 }
 0x1b2   : > { %v1231_v60 = vadd.f32 %v3748_v38, %v1077_v59  ;;  %1453 = vmatprep.mubr.f32.mxu1 %v1293_v55 }
 0x1b3   : > { %1454 = vmatmul.mubr.f32.gmra.mrb[54].mxu1 %v1292_v57  ;;  %v1294_v63 = vmax.f32 %v1230_v58, 0.0 }
 0x1b4   : > { %v1295_v61 = vmax.f32 %v1231_v60, 0.0  ;;  %v1081_v62 = vpop.f32.mrb[26].mxu0 }
 0x1b5   : > { %v1232_v25 = vadd.f32 %v3744_v36, %v1081_v62  ;;  %v1083_v28 = vpop.f32.mrb[27].mxu0 }
 0x1b6   : > { %v1233_v31 = vadd.f32 %v3748_v38, %v1083_v28  ;;  %1458 = vmatprep.mubr.f32.mxu1 %v1295_v61 }
 0x1b7   : > { %1459 = vmatmul.mubr.f32.gmra.mrb[56].mxu1 %v1294_v63  ;;  %v1296_v39 = vmax.f32 %v1232_v25, 0.0 }
 0x1b8   : > { %v1297_v33 = vmax.f32 %v1233_v31, 0.0  ;;  %v1087_v34 = vpop.f32.mrb[28].mxu0 }
 0x1b9   : > { %v1234_v40 = vadd.f32 %v3744_v36, %v1087_v34  ;;  %v1089_v41 = vpop.f32.mrb[29].mxu0 }
 0x1ba   : > { %v1235_v42 = vadd.f32 %v3748_v38, %v1089_v41  ;;  %1463 = vmatprep.mubr.f32.mxu1 %v1297_v33 }
 0x1bb   : > { %1464 = vmatmul.mubr.f32.gmra.mrb[58].mxu1 %v1296_v39  ;;  %v1298_v45 = vmax.f32 %v1234_v40, 0.0 }
 0x1bc   : > { %v1299_v43 = vmax.f32 %v1235_v42, 0.0  ;;  %v1093_v44 = vpop.f32.mrb[30].mxu0 }
 0x1bd   : > { %v1236_v46 = vadd.f32 %v3744_v36, %v1093_v44  ;;  %v1095_v48 = vpop.f32.mrb[31].mxu0 }
 0x1be   : > { %v1237_v50 = vadd.f32 %v3748_v38, %v1095_v48  ;;  %1468 = vmatprep.mubr.f32.mxu1 %v1299_v43 }
 0x1bf   : > { %1469 = vmatmul.mubr.f32.gmra.mrb[60].mxu1 %v1298_v45  ;;  %v1300_v53 = vmax.f32 %v1236_v46, 0.0 }
 0x1c0   : > { %v1301_v51 = vmax.f32 %v1237_v50, 0.0  ;;  %v1099_v52 = vpop.f32.mrb[32].mxu0 }
 0x1c1   : > { %v1100_v54 = vadd.f32 %v1099_v52, %v3679_v0  ;;  %v1101_v55 = vpop.f32.mrb[33].mxu0 }
 0x1c2   : > { %v1102_v56 = vadd.f32 %v1101_v55, %v3681_v1  ;;  %1473 = vmatprep.mubr.f32.mxu1 %v1301_v51 }
 0x1c3   : > { %v1238_v57 = vadd.f32 %v3744_v36, %v1100_v54  ;;  %1474 = vmatmul.mubr.f32.gmra.mrb[62].mxu1 %v1300_v53 }
 0x1c4   : > { %v1239_v58 = vadd.f32 %v3748_v38, %v1102_v56  ;;  %v1105_v59 = vpop.f32.mrb[34].mxu0 }
 0x1c5   : > { %v1106_v60 = vadd.f32 %v1105_v59, %v3683_v2  ;;  %v1107_v61 = vpop.f32.mrb[35].mxu0  ;;  %v1302_v25 = vmax.f32 %v1238_v57, 0.0 }
 0x1c6   : > { %v1303_v62 = vmax.f32 %v1239_v58, 0.0  ;;  %v1108_v63 = vadd.f32 %v1107_v61, %v3685_v3 }
 0x1c7   : > { %v1240_v28 = vadd.f32 %v3744_v36, %v1106_v60 }
 0x1c8   : > { %v1241_v0 = vadd.f32 %v3748_v38, %v1108_v63  ;;  %v1111_v31 = vpop.f32.mrb[36].mxu0  ;;  %1478 = vmatprep.mubr.f32.mxu1 %v1303_v62 }
 0x1c9   : > { %v1112_v1 = vadd.f32 %v1111_v31, %v3687_v4  ;;  %v1113_v33 = vpop.f32.mrb[37].mxu0  ;;  %1479 = vmatmul.mubr.f32.gmra.mrb[64].mxu1 %v1302_v25  ;;  %v1304_v40 = vmax.f32 %v1240_v28, 0.0 }
 0x1ca   : > { %v1305_v34 = vmax.f32 %v1241_v0, 0.0  ;;  %v1114_v39 = vadd.f32 %v1113_v33, %v3689_v5 }
 0x1cb   : > { %v1242_v2 = vadd.f32 %v3744_v36, %v1112_v1 }
 0x1cc   : > { %v1243_v41 = vadd.f32 %v3748_v38, %v1114_v39  ;;  %v1117_v3 = vpop.f32.mrb[38].mxu0  ;;  %1483 = vmatprep.mubr.f32.mxu1 %v1305_v34 }
 0x1cd   : > { %v1118_v42 = vadd.f32 %v1117_v3, %v3691_v6  ;;  %v1119_v43 = vpop.f32.mrb[39].mxu0  ;;  %1484 = vmatmul.mubr.f32.gmra.mrb[66].mxu1 %v1304_v40  ;;  %v1306_v4 = vmax.f32 %v1242_v2, 0.0 }
 0x1ce   : > { %v1307_v44 = vmax.f32 %v1243_v41, 0.0  ;;  %v1120_v45 = vadd.f32 %v1119_v43, %v3693_v7 }
 0x1cf   : > { %v1244_v46 = vadd.f32 %v3744_v36, %v1118_v42 }
 0x1d0   : > { %v1245_v48 = vadd.f32 %v3748_v38, %v1120_v45  ;;  %v1123_v5 = vpop.f32.mrb[40].mxu0  ;;  %1488 = vmatprep.mubr.f32.mxu1 %v1307_v44 }
 0x1d1   : > { %v1124_v50 = vadd.f32 %v1123_v5, %v3695_v8  ;;  %v1125_v51 = vpop.f32.mrb[41].mxu0  ;;  %1489 = vmatmul.mubr.f32.gmra.mrb[68].mxu1 %v1306_v4  ;;  %v1308_v6 = vmax.f32 %v1244_v46, 0.0 }
 0x1d2   : > { %v1309_v52 = vmax.f32 %v1245_v48, 0.0  ;;  %v1126_v53 = vadd.f32 %v1125_v51, %v3697_v9 }
 0x1d3   : > { %v1246_v54 = vadd.f32 %v3744_v36, %v1124_v50 }
 0x1d4   : > { %v1247_v55 = vadd.f32 %v3748_v38, %v1126_v53  ;;  %v1129_v7 = vpop.f32.mrb[42].mxu0  ;;  %1493 = vmatprep.mubr.f32.mxu1 %v1309_v52 }
 0x1d5   : > { %v1130_v56 = vadd.f32 %v1129_v7, %v3699_v10  ;;  %v1131_v57 = vpop.f32.mrb[43].mxu0  ;;  %1494 = vmatmul.mubr.f32.gmra.mrb[70].mxu1 %v1308_v6  ;;  %v1310_v8 = vmax.f32 %v1246_v54, 0.0 }
 0x1d6   : > { %v1311_v58 = vmax.f32 %v1247_v55, 0.0  ;;  %v1132_v59 = vadd.f32 %v1131_v57, %v3701_v11 }
 0x1d7   : > { %v1248_v60 = vadd.f32 %v3744_v36, %v1130_v56 }
 0x1d8   : > { %v1249_v61 = vadd.f32 %v3748_v38, %v1132_v59  ;;  %v1135_v9 = vpop.f32.mrb[44].mxu0  ;;  %1498 = vmatprep.mubr.f32.mxu1 %v1311_v58 }
 0x1d9   : > { %v1136_v62 = vadd.f32 %v1135_v9, %v3703_v12  ;;  %v1137_v63 = vpop.f32.mrb[45].mxu0  ;;  %1499 = vmatmul.mubr.f32.gmra.mrb[72].mxu1 %v1310_v8  ;;  %v1312_v10 = vmax.f32 %v1248_v60, 0.0 }
 0x1da   : > { %v1313_v25 = vmax.f32 %v1249_v61, 0.0  ;;  %v1138_v28 = vadd.f32 %v1137_v63, %v3705_v13 }
 0x1db   : > { %v1250_v0 = vadd.f32 %v3744_v36, %v1136_v62 }
 0x1dc   : > { %v1251_v31 = vadd.f32 %v3748_v38, %v1138_v28  ;;  %v1141_v11 = vpop.f32.mrb[46].mxu0  ;;  %1503 = vmatprep.mubr.f32.mxu1 %v1313_v25 }
 0x1dd   : > { %v1142_v1 = vadd.f32 %v1141_v11, %v3707_v14  ;;  %v1143_v33 = vpop.f32.mrb[47].mxu0  ;;  %1504 = vmatmul.mubr.f32.gmra.mrb[74].mxu1 %v1312_v10  ;;  %v1314_v12 = vmax.f32 %v1250_v0, 0.0 }
 0x1de   : > { %v1315_v34 = vmax.f32 %v1251_v31, 0.0  ;;  %v1144_v39 = vadd.f32 %v1143_v33, %v3709_v15 }
 0x1df   : > { %v1252_v40 = vadd.f32 %v3744_v36, %v1142_v1 }
 0x1e0   : > { %v1253_v2 = vadd.f32 %v3748_v38, %v1144_v39  ;;  %v1147_v13 = vpop.f32.mrb[48].mxu0  ;;  %1508 = vmatprep.mubr.f32.mxu1 %v1315_v34 }
 0x1e1   : > { %v1148_v41 = vadd.f32 %v1147_v13, %v3711_v16  ;;  %v1149_v3 = vpop.f32.mrb[49].mxu0  ;;  %1509 = vmatmul.mubr.f32.gmra.mrb[76].mxu1 %v1314_v12  ;;  %v1316_v14 = vmax.f32 %v1252_v40, 0.0  ;;  %v453_v13 = vld [vmem:[%s4363_s6] sm:$0xff] }
 0x1e2   : > { %v1317_v42 = vmax.f32 %v1253_v2, 0.0  ;;  %v1150_v43 = vadd.f32 %v1149_v3, %v3713_v17 }
 0x1e3   : > { %v1254_v44 = vadd.f32 %v3744_v36, %v1148_v41 }
 0x1e4   : > { %v1255_v45 = vadd.f32 %v3748_v38, %v1150_v43  ;;  %v1153_v15 = vpop.f32.mrb[50].mxu0  ;;  %1513 = vmatprep.mubr.f32.mxu1 %v1317_v42 }
 0x1e5   : > { %v1154_v4 = vadd.f32 %v1153_v15, %v3715_v18  ;;  %v1155_v46 = vpop.f32.mrb[51].mxu0  ;;  %1514 = vmatmul.mubr.f32.gmra.mrb[78].mxu1 %v1316_v14  ;;  %v1318_v16 = vmax.f32 %v1254_v44, 0.0 }
 0x1e6   : > { %v1319_v48 = vmax.f32 %v1255_v45, 0.0  ;;  %v1156_v5 = vadd.f32 %v1155_v46, %v3717_v19 }
 0x1e7   : > { %v1256_v50 = vadd.f32 %v3744_v36, %v1154_v4 }
 0x1e8   : > { %v1257_v51 = vadd.f32 %v3748_v38, %v1156_v5  ;;  %v1159_v17 = vpop.f32.mrb[52].mxu0  ;;  %1518 = vmatprep.mubr.f32.mxu1 %v1319_v48 }
 0x1e9   : > { %v1160_v52 = vadd.f32 %v1159_v17, %v3719_v20  ;;  %v1161_v53 = vpop.f32.mrb[53].mxu0  ;;  %1519 = vmatmul.mubr.f32.gmra.mrb[80].mxu1 %v1318_v16  ;;  %v1320_v18 = vmax.f32 %v1256_v50, 0.0 }
 0x1ea   : > { %v1321_v6 = vmax.f32 %v1257_v51, 0.0  ;;  %v1162_v54 = vadd.f32 %v1161_v53, %v3721_v21 }
 0x1eb   : > { %v1258_v55 = vadd.f32 %v3744_v36, %v1160_v52 }
 0x1ec   : > { %v1259_v7 = vadd.f32 %v3748_v38, %v1162_v54  ;;  %v1165_v19 = vpop.f32.mrb[54].mxu0  ;;  %1523 = vmatprep.mubr.f32.mxu1 %v1321_v6 }
 0x1ed   : > { %v1166_v56 = vadd.f32 %v1165_v19, %v3723_v22  ;;  %v1167_v57 = vpop.f32.mrb[55].mxu0  ;;  %1524 = vmatmul.mubr.f32.gmra.mrb[82].mxu1 %v1320_v18  ;;  %v1322_v20 = vmax.f32 %v1258_v55, 0.0 }
 0x1ee   : > { %v1323_v58 = vmax.f32 %v1259_v7, 0.0  ;;  %v1168_v59 = vadd.f32 %v1167_v57, %v3725_v23 }
 0x1ef   : > { %v1260_v8 = vadd.f32 %v3744_v36, %v1166_v56 }
 0x1f0   : > { %v1261_v60 = vadd.f32 %v3748_v38, %v1168_v59  ;;  %v1171_v21 = vpop.f32.mrb[56].mxu0  ;;  %1528 = vmatprep.mubr.f32.mxu1 %v1323_v58 }
 0x1f1   : > { %v1172_v61 = vadd.f32 %v1171_v21, %v3727_v24  ;;  %v1173_v9 = vpop.f32.mrb[57].mxu0  ;;  %1529 = vmatmul.mubr.f32.gmra.mrb[84].mxu1 %v1322_v20  ;;  %v1324_v22 = vmax.f32 %v1260_v8, 0.0 }
 0x1f2   : > { %v1325_v62 = vmax.f32 %v1261_v60, 0.0  ;;  %v1174_v63 = vadd.f32 %v1173_v9, %v3729_v26 }
 0x1f3   : > { %v1262_v25 = vadd.f32 %v3744_v36, %v1172_v61 }
 0x1f4   : > { %v1263_v28 = vadd.f32 %v3748_v38, %v1174_v63  ;;  %v1177_v23 = vpop.f32.mrb[58].mxu0  ;;  %1533 = vmatprep.mubr.f32.mxu1 %v1325_v62 }
 0x1f5   : > { %v1178_v10 = vadd.f32 %v1177_v23, %v3731_v27  ;;  %v1179_v0 = vpop.f32.mrb[59].mxu0  ;;  %1534 = vmatmul.mubr.f32.gmra.mrb[86].mxu1 %v1324_v22  ;;  %v1326_v24 = vmax.f32 %v1262_v25, 0.0 }
 0x1f6   : > { %v1327_v31 = vmax.f32 %v1263_v28, 0.0  ;;  %v1180_v11 = vadd.f32 %v1179_v0, %v3733_v29  ;;  %v454_v29 = vld [vmem:[%s4363_s6 + $0x8] sm:$0xff] }
 0x1f7   : > { %v1264_v1 = vadd.f32 %v3744_v36, %v1178_v10  ;;  %1944 = vmatprep.subr.mxu1 %v454_v29 }
 0x1f8   : > { %v1265_v33 = vadd.f32 %v3748_v38, %v1180_v11  ;;  %v1183_v26 = vpop.f32.mrb[60].mxu0  ;;  %1538 = vmatprep.mubr.f32.mxu1 %v1327_v31  ;;  %1945 = vmatpush1.msra.mxu1 %v453_v13 }
 0x1f9   : > { %v1184_v34 = vadd.f32 %v1183_v26, %v3735_v30  ;;  %v1185_v39 = vpop.f32.mrb[61].mxu0  ;;  %1539 = vmatmul.mubr.f32.gmra.mrb[88].mxu1 %v1326_v24  ;;  %v1328_v27 = vmax.f32 %v1264_v1, 0.0 }
 0x1fa   : > { %v1329_v12 = vmax.f32 %v1265_v33, 0.0  ;;  %v1186_v40 = vadd.f32 %v1185_v39, %v3737_v32 }
 0x1fb   : > { %v1266_v2 = vadd.f32 %v3744_v36, %v1184_v34 }
 0x1fc   : > { %v1267_v41 = vadd.f32 %v3748_v38, %v1186_v40  ;;  %v1189_v3 = vpop.f32.mrb[62].mxu0  ;;  %1543 = vmatprep.mubr.f32.mxu1 %v1329_v12 }
 0x1fd   : > { %v1190_v30 = vadd.f32 %v1189_v3, %v3742_v35  ;;  %v1191_v42 = vpop.f32.mrb[63].mxu0  ;;  %1544 = vmatmul.mubr.f32.gmra.mrb[90].mxu1 %v1328_v27  ;;  %v1330_v14 = vmax.f32 %v1266_v2, 0.0 }
 0x1fe   : > { %v1331_v32 = vmax.f32 %v1267_v41, 0.0  ;;  %v1192_v43 = vadd.f32 %v1191_v42, %v3746_v37 }
 0x1ff   : > { %v1268_v44 = vadd.f32 %v3744_v36, %v1190_v30 }
 0x200   : > { %v1269_v45 = vadd.f32 %v3748_v38, %v1192_v43  ;;  %1548 = vmatprep.mubr.f32.mxu1 %v1331_v32 }
 0x201   : > { %1549 = vmatmul.mubr.f32.gmra.mrb[92].mxu1 %v1330_v14  ;;  %v1332_v4 = vmax.f32 %v1268_v44, 0.0 }
 0x202   : > { %v1333_v15 = vmax.f32 %v1269_v45, 0.0 }
 0x204   : > { %1553 = vmatprep.mubr.f32.mxu1 %v1333_v15 }
 0x205   : > { %1554 = vmatmul.mubr.f32.gmra.mrb[94].mxu1 %v1332_v4 }
 0x206   : > { %2008 = vmatprep.mubr.f32.mxu1 %v3269_v47 }
 0x25a   : > { %v3853_v35 = vpop.f32.mrb[32].mxu1 }
 0x25b   : > { %v1402_v46 = vpop.f32.mrb[33].mxu1  ;;  %v1560_v37 = vsel %vm1559_vm1, %v3853_v35, -inf }
 0x25c   : > { %1561 = vmax.xlane.f32.xlu0 %v1560_v37 }
 0x25e   : > { %v3857_v48 = vpop.f32.mrb[34].mxu1 }
 0x25f   : > { %v1407_v36 = vpop.f32.mrb[35].mxu1  ;;  %v1563_v38 = vsel %vm1559_vm1, %v3857_v48, -inf }
 0x260   : > { %1564 = vmax.xlane.f32.xlu0 %v1563_v38 }
 0x262   : > { %v3861_v5 = vpop.f32.mrb[36].mxu1 }
 0x263   : > { %v1412_v16 = vpop.f32.mrb[37].mxu1  ;;  %v1566_v50 = vsel %vm1559_vm1, %v3861_v5, -inf }
 0x264   : > { %1567 = vmax.xlane.f32.xlu1 %v1566_v50 }
 0x266   : > { %v3865_v51 = vpop.f32.mrb[38].mxu1 }
 0x267   : > { %v1417_v17 = vpop.f32.mrb[39].mxu1  ;;  %v1569_v52 = vsel %vm1559_vm1, %v3865_v51, -inf }
 0x268   : > { %1570 = vmax.xlane.f32.xlu1 %v1569_v52 }
 0x26a   : > { %v3869_v53 = vpop.f32.mrb[40].mxu1 }
 0x26b   : > { %v1422_v6 = vpop.f32.mrb[41].mxu1  ;;  %v1572_v54 = vsel %vm1559_vm1, %v3869_v53, -inf }
 0x26c   : > { %1573 = vmax.xlane.f32.xlu0 %v1572_v54 }
 0x26e   : > { %v3873_v18 = vpop.f32.mrb[42].mxu1 }
 0x26f   : > { %v1427_v55 = vpop.f32.mrb[43].mxu1  ;;  %v1575_v7 = vsel %vm1559_vm1, %v3873_v18, -inf }
 0x270   : > { %1576 = vmax.xlane.f32.xlu1 %v1575_v7 }
 0x272   : > { %v3877_v19 = vpop.f32.mrb[44].mxu1 }
 0x273   : > { %v1432_v56 = vpop.f32.mrb[45].mxu1  ;;  %v1578_v57 = vsel %vm1559_vm1, %v3877_v19, -inf }
 0x274   : > { %1579 = vmax.xlane.f32.xlu0 %v1578_v57 }
 0x276   : > { %v3881_v58 = vpop.f32.mrb[46].mxu1 }
 0x277   : > { %v1437_v59 = vpop.f32.mrb[47].mxu1  ;;  %v1581_v20 = vsel %vm1559_vm1, %v3881_v58, -inf }
 0x278   : > { %1582 = vmax.xlane.f32.xlu1 %v1581_v20 }
 0x27a   : > { %v3885_v8 = vpop.f32.mrb[48].mxu1 }
 0x27b   : > { %v1442_v60 = vpop.f32.mrb[49].mxu1  ;;  %v1584_v21 = vsel %vm1559_vm1, %v3885_v8, -inf }
 0x27c   : > { %1585 = vmax.xlane.f32.xlu0 %v1584_v21 }
 0x27e   : > { %v3889_v61 = vpop.f32.mrb[50].mxu1 }
 0x27f   : > { %v1447_v9 = vpop.f32.mrb[51].mxu1  ;;  %v1587_v62 = vsel %vm1559_vm1, %v3889_v61, -inf }
 0x280   : > { %1588 = vmax.xlane.f32.xlu1 %v1587_v62 }
 0x282   : > { %v3893_v63 = vpop.f32.mrb[52].mxu1 }
 0x283   : > { %v1452_v22 = vpop.f32.mrb[53].mxu1  ;;  %v1590_v25 = vsel %vm1559_vm1, %v3893_v63, -inf }
 0x284   : > { %1591 = vmax.xlane.f32.xlu0 %v1590_v25 }
 0x286   : > { %v3897_v28 = vpop.f32.mrb[54].mxu1 }
 0x287   : > { %v1457_v23 = vpop.f32.mrb[55].mxu1  ;;  %v1593_v10 = vsel %vm1559_vm1, %v3897_v28, -inf }
 0x288   : > { %1594 = vmax.xlane.f32.xlu1 %v1593_v10 }
 0x28a   : > { %v3901_v0 = vpop.f32.mrb[56].mxu1 }
 0x28b   : > { %v1462_v31 = vpop.f32.mrb[57].mxu1  ;;  %v1596_v11 = vsel %vm1559_vm1, %v3901_v0, -inf }
 0x28c   : > { %1597 = vmax.xlane.f32.xlu0 %v1596_v11 }
 0x28e   : > { %v3905_v24 = vpop.f32.mrb[58].mxu1 }
 0x28f   : > { %v1467_v1 = vpop.f32.mrb[59].mxu1  ;;  %v1599_v33 = vsel %vm1559_vm1, %v3905_v24, -inf }
 0x290   : > { %1600 = vmax.xlane.f32.xlu1 %v1599_v33 }
 0x292   : > { %v3909_v26 = vpop.f32.mrb[60].mxu1 }
 0x293   : > { %v1472_v34 = vpop.f32.mrb[61].mxu1  ;;  %v1602_v39 = vsel %vm1559_vm1, %v3909_v26, -inf }
 0x294   : > { %1603 = vmax.xlane.f32.xlu0 %v1602_v39 }
 0x296   : > { %v3913_v12 = vpop.f32.mrb[62].mxu1 }
 0x297   : > { %v1477_v40 = vpop.f32.mrb[63].mxu1  ;;  %v1605_v27 = vsel %vm1559_vm1, %v3913_v12, -inf }
 0x298   : > { %1606 = vmax.xlane.f32.xlu1 %v1605_v27 }
 0x29c   : > { %v3917_v2 = vpop.f32.mrb[64].mxu1 }
 0x29d   : > { %v1482_v29 = vpop.f32.mrb[65].mxu1  ;;  %v1608_v13 = vsel %vm1559_vm1, %v3917_v2, -inf }
 0x29e   : > { %1609 = vmax.xlane.f32.xlu0 %v1608_v13  ;;  %v455_v29 = vld [vmem:[%s4364_s7] sm:$0xff]  ;;  %v456_v13 = vld [vmem:[%s4364_s7 + $0x8] sm:$0xff] }
 0x2a0   : > { %v3921_v41 = vpop.f32.mrb[66].mxu1 }
 0x2a1   : > { %v1487_v3 = vpop.f32.mrb[67].mxu1  ;;  %v1611_v30 = vsel %vm1559_vm1, %v3921_v41, -inf }
 0x2a2   : > { %1612 = vmax.xlane.f32.xlu1 %v1611_v30 }
 0x2a4   : > { %v3925_v42 = vpop.f32.mrb[68].mxu1 }
 0x2a5   : > { %v1492_v32 = vpop.f32.mrb[69].mxu1  ;;  %v1614_v43 = vsel %vm1559_vm1, %v3925_v42, -inf }
 0x2a6   : > { %1615 = vmax.xlane.f32.xlu0 %v1614_v43  ;;  %v2868_v32 = vpack.c.bf16 %v456_v13, %v455_v29  ;;  %v457_v43 = vld [vmem:[%s4364_s7 + $0x10] sm:$0xff] }
 0x2a8   : > { %v3929_v14 = vpop.f32.mrb[70].mxu1  ;;  %2869 = vmatpush1.bf16.msra.mxu0 %v2868_v32 }
 0x2a9   : > { %v1497_v44 = vpop.f32.mrb[71].mxu1  ;;  %v1617_v45 = vsel %vm1559_vm1, %v3929_v14, -inf  ;;  %2870 = vmatprep.subr.bf16.mxu0 %v3270_v49 }
 0x2aa   : > { %1618 = vmax.xlane.f32.xlu1 %v1617_v45  ;;  %v458_v44 = vld [vmem:[%s4364_s7 + $0x18] sm:$0xff] }
 0x2ab   : > { %v2871_v45 = vpack.c.bf16 %v458_v44, %v457_v43 }
 0x2ac   : > { %v3933_v15 = vpop.f32.mrb[72].mxu1 }
 0x2ad   : > { %v1502_v4 = vpop.f32.mrb[73].mxu1  ;;  %v1620_v46 = vsel %vm1559_vm1, %v3933_v15, -inf  ;;  %2872 = vmatpush1.bf16.msra.mxu0 %v2871_v45 }
 0x2ae   : > { %1621 = vmax.xlane.f32.xlu0 %v1620_v46  ;;  %2873 = vmatprep.subr.bf16.mxu0 %v3270_v49  ;;  %v459_v4 = vld [vmem:[%s4364_s7 + $0x20] sm:$0xff]  ;;  %v460_v46 = vld [vmem:[%s4364_s7 + $0x28] sm:$0xff] }
 0x2b0   : > { %v3937_v37 = vpop.f32.mrb[74].mxu1 }
 0x2b1   : > { %v1507_v36 = vpop.f32.mrb[75].mxu1  ;;  %v1623_v38 = vsel %vm1559_vm1, %v3937_v37, -inf }
 0x2b2   : > { %1624 = vmax.xlane.f32.xlu1 %v1623_v38  ;;  %v2874_v38 = vpack.c.bf16 %v460_v46, %v459_v4 }
 0x2b4   : > { %v3941_v16 = vpop.f32.mrb[76].mxu1  ;;  %2875 = vmatpush1.bf16.msra.mxu0 %v2874_v38 }
 0x2b5   : > { %v1512_v50 = vpop.f32.mrb[77].mxu1  ;;  %v1626_v17 = vsel %vm1559_vm1, %v3941_v16, -inf  ;;  %2876 = vmatprep.subr.bf16.mxu0 %v3270_v49 }
 0x2b6   : > { %1627 = vmax.xlane.f32.xlu0 %v1626_v17 }
 0x2b8   : > { %v3945_v52 = vpop.f32.mrb[78].mxu1 }
 0x2b9   : > { %v1517_v6 = vpop.f32.mrb[79].mxu1  ;;  %v1629_v54 = vsel %vm1559_vm1, %v3945_v52, -inf }
 0x2ba   : > { %1630 = vmax.xlane.f32.xlu1 %v1629_v54  ;;  %v461_v6 = vld [vmem:[%s4364_s7 + $0x30] sm:$0xff]  ;;  %v462_v54 = vld [vmem:[%s4364_s7 + $0x38] sm:$0xff] }
 0x2bc   : > { %v3949_v55 = vpop.f32.mrb[80].mxu1 }
 0x2bd   : > { %v1522_v7 = vpop.f32.mrb[81].mxu1  ;;  %v1632_v56 = vsel %vm1559_vm1, %v3949_v55, -inf }
 0x2be   : > { %1633 = vmax.xlane.f32.xlu0 %v1632_v56  ;;  %v2877_v56 = vpack.c.bf16 %v462_v54, %v461_v6 }
 0x2c0   : > { %v3953_v57 = vpop.f32.mrb[82].mxu1  ;;  %2878 = vmatpush1.bf16.msra.mxu0 %v2877_v56 }
 0x2c1   : > { %v1527_v59 = vpop.f32.mrb[83].mxu1  ;;  %v1635_v20 = vsel %vm1559_vm1, %v3953_v57, -inf  ;;  %2879 = vmatprep.subr.bf16.mxu0 %v3270_v49 }
 0x2c2   : > { %1636 = vmax.xlane.f32.xlu1 %v1635_v20 }
 0x2c4   : > { %v3957_v60 = vpop.f32.mrb[84].mxu1 }
 0x2c5   : > { %v1532_v21 = vpop.f32.mrb[85].mxu1  ;;  %v1638_v9 = vsel %vm1559_vm1, %v3957_v60, -inf }
 0x2c6   : > { %1639 = vmax.xlane.f32.xlu0 %v1638_v9  ;;  %v463_v9 = vld [vmem:[%s4364_s7 + $0x40] sm:$0xff] }
 0x2c8   : > { %v3961_v62 = vpop.f32.mrb[86].mxu1 }
 0x2c9   : > { %v1537_v22 = vpop.f32.mrb[87].mxu1  ;;  %v1641_v25 = vsel %vm1559_vm1, %v3961_v62, -inf }
 0x2ca   : > { %1642 = vmax.xlane.f32.xlu1 %v1641_v25  ;;  %v464_v22 = vld [vmem:[%s4364_s7 + $0x48] sm:$0xff] }
 0x2cc   : > { %v3965_v23 = vpop.f32.mrb[88].mxu1 }
 0x2cd   : > { %v1542_v10 = vpop.f32.mrb[89].mxu1  ;;  %v1644_v31 = vsel %vm1559_vm1, %v3965_v23, -inf }
 0x2ce   : > { %1645 = vmax.xlane.f32.xlu0 %v1644_v31  ;;  %v2880_v10 = vpack.c.bf16 %v464_v22, %v463_v9 }
 0x2d0   : > { %v3969_v11 = vpop.f32.mrb[90].mxu1  ;;  %2881 = vmatpush1.bf16.msra.mxu0 %v2880_v10 }
 0x2d1   : > { %v1547_v1 = vpop.f32.mrb[91].mxu1  ;;  %v1647_v33 = vsel %vm1559_vm1, %v3969_v11, -inf  ;;  %2882 = vmatprep.subr.bf16.mxu0 %v3270_v49 }
 0x2d2   : > { %1648 = vmax.xlane.f32.xlu1 %v1647_v33 }
 0x2d4   : > { %v3973_v34 = vpop.f32.mrb[92].mxu1 }
 0x2d5   : > { %v1552_v39 = vpop.f32.mrb[93].mxu1  ;;  %v1650_v40 = vsel %vm1559_vm1, %v3973_v34, -inf }
 0x2d6   : > { %1651 = vmax.xlane.f32.xlu0 %v1650_v40  ;;  %v466_v39 = vld [vmem:[%s4364_s7 + $0x58] sm:$0xff]  ;;  %v467_v40 = vld [vmem:[%s4364_s7 + $0x60] sm:$0xff] }
 0x2d8   : > { %v3977_v27 = vpop.f32.mrb[94].mxu1 }
 0x2d9   : > { %v1557_v3 = vpop.f32.mrb[95].mxu1  ;;  %v1653_v30 = vsel %vm1559_vm1, %v3977_v27, -inf }
 0x2da   : > { %1654 = vmax.xlane.f32.xlu1 %v1653_v30  ;;  %v468_v3 = vld [vmem:[%s4364_s7 + $0x68] sm:$0xff] }
 0x2db   : > { %v2886_v32 = vpack.c.bf16 %v468_v3, %v467_v40 }
 0x2e9   : > { %v1562_v36 = vpop.xlane.xlu0 %1561 }
 0x2ea   : > { %v1656_v50 = vsub.f32 %v3853_v35, %v1562_v36 }
 0x2ec   : > { %v1688_v17 = vmul.f32 1.442695, %v1656_v50 }
 0x2ed   : > { %v1565_v7 = vpop.xlane.xlu0 %1564 }
 0x2ee   : > { %3034 = vpow2.f32 %v1688_v17  ;;  %v1657_v59 = vsub.f32 %v3857_v48, %v1565_v7 }
 0x2f0   : > { %v1690_v20 = vmul.f32 1.442695, %v1657_v59 }
 0x2f1   : > { %v1568_v35 = vpop.xlane.xlu1 %1567 }
 0x2f2   : > { %3036 = vpow2.f32 %v1690_v20  ;;  %v1658_v21 = vsub.f32 %v3861_v5, %v1568_v35  ;;  %v465_v5 = vld [vmem:[%s4364_s7 + $0x50] sm:$0xff] }
 0x2f3   : > { %v2883_v13 = vpack.c.bf16 %v466_v39, %v465_v5 }
 0x2f4   : > { %v1692_v25 = vmul.f32 1.442695, %v1658_v21 }
 0x2f5   : > { %v1571_v31 = vpop.xlane.xlu1 %1570  ;;  %2884 = vmatpush1.bf16.msra.mxu0 %v2883_v13  ;;  %v472_v13 = vld [vmem:[%s4364_s7 + $0x88] sm:$0xff] }
 0x2f6   : > { %3038 = vpow2.f32 %v1692_v25  ;;  %v1659_v48 = vsub.f32 %v3865_v51, %v1571_v31  ;;  %2885 = vmatprep.subr.bf16.mxu0 %v3270_v49  ;;  %v470_v25 = vld [vmem:[%s4364_s7 + $0x78] sm:$0xff] }
 0x2f8   : > { %v3035_v1 = vpop.eup %3034  ;;  %v1694_v33 = vmul.f32 1.442695, %v1659_v48 }
 0x2f9   : > { %v1574_v29 = vpop.xlane.xlu0 %1573  ;;  %2712 = vmatmul.mubr.msk.f32.vlgmr.msra.gmra.mrb[96].mxu1 %vm1559_vm1, %v3035_v1  ;;  %v1752_v51 = vsel %vm1559_vm1, %v3035_v1, 0.0  ;;  %2887 = vmatpush1.bf16.msra.mxu0 %v2886_v32 }
 0x2fa   : > { %3040 = vpow2.f32 %v1694_v33  ;;  %v1660_v30 = vsub.f32 %v3869_v53, %v1574_v29  ;;  %1753 = vadd.xlane.f32.xlu0 %v1752_v51  ;;  %2014 = vmatprep.mubr.f32.mxu1 %v3269_v47  ;;  %v471_v51 = vld [vmem:[%s4364_s7 + $0x80] sm:$0xff] }
 0x2fb   : > { %2888 = vmatprep.subr.bf16.mxu0 %v3270_v49  ;;  %v2892_v32 = vpack.c.bf16 %v472_v13, %v471_v51 }
 0x2fc   : > { %v3037_v43 = vpop.eup %3036  ;;  %v1696_v44 = vmul.f32 1.442695, %v1660_v30 }
 0x2fd   : > { %v1577_v45 = vpop.xlane.xlu1 %1576  ;;  %2713 = vmatmul.mubr.msk.f32.gmra.mrb[98].mxu1 %vm1559_vm1, %v3037_v43  ;;  %v1755_v4 = vsel %vm1559_vm1, %v3037_v43, 0.0 }
 0x2fe   : > { %3042 = vpow2.f32 %v1696_v44  ;;  %v1661_v46 = vsub.f32 %v3873_v18, %v1577_v45  ;;  %1756 = vadd.xlane.f32.xlu1 %v1755_v4  ;;  %2020 = vmatprep.mubr.f32.mxu1 %v3269_v47 }
 0x300   : > { %v3039_v53 = vpop.eup %3038  ;;  %v1698_v36 = vmul.f32 1.442695, %v1661_v46 }
 0x301   : > { %v1580_v38 = vpop.xlane.xlu0 %1579  ;;  %2714 = vmatmul.mubr.msk.f32.gmra.mrb[100].mxu1 %vm1559_vm1, %v3039_v53  ;;  %v1758_v50 = vsel %vm1559_vm1, %v3039_v53, 0.0 }
 0x302   : > { %3044 = vpow2.f32 %v1698_v36  ;;  %v1662_v17 = vsub.f32 %v3877_v19, %v1580_v38  ;;  %1759 = vadd.xlane.f32.xlu0 %v1758_v50  ;;  %2026 = vmatprep.mubr.f32.mxu1 %v3269_v47  ;;  %v473_v36 = vld [vmem:[%s4364_s7 + $0x90] sm:$0xff]  ;;  %v474_v38 = vld [vmem:[%s4364_s7 + $0x98] sm:$0xff] }
 0x304   : > { %v3041_v18 = vpop.eup %3040  ;;  %v1700_v6 = vmul.f32 1.442695, %v1662_v17 }
 0x305   : > { %v1583_v54 = vpop.xlane.xlu1 %1582  ;;  %2715 = vmatmul.mubr.msk.f32.gmra.mrb[102].mxu1 %vm1559_vm1, %v3041_v18  ;;  %v1761_v7 = vsel %vm1559_vm1, %v3041_v18, 0.0  ;;  %v2895_v18 = vpack.c.bf16 %v474_v38, %v473_v36  ;;  %v481_v38 = vld [vmem:[%s4364_s7 + $0xd0] sm:$0xff] }
 0x306   : > { %3046 = vpow2.f32 %v1700_v6  ;;  %v1663_v56 = vsub.f32 %v3881_v58, %v1583_v54  ;;  %1762 = vadd.xlane.f32.xlu1 %v1761_v7  ;;  %2032 = vmatprep.mubr.f32.mxu1 %v3269_v47  ;;  %v469_v58 = vld [vmem:[%s4364_s7 + $0x70] sm:$0xff] }
 0x307   : > { %v2889_v48 = vpack.c.bf16 %v470_v25, %v469_v58 }
 0x308   : > { %v3043_v59 = vpop.eup %3042  ;;  %v1702_v20 = vmul.f32 1.442695, %v1663_v56 }
 0x309   : > { %v1586_v35 = vpop.xlane.xlu0 %1585  ;;  %2716 = vmatmul.mubr.msk.f32.gmra.mrb[104].mxu1 %vm1559_vm1, %v3043_v59  ;;  %v1764_v19 = vsel %vm1559_vm1, %v3043_v59, 0.0  ;;  %2890 = vmatpush1.bf16.msra.mxu0 %v2889_v48 }
 0x30a   : > { %3048 = vpow2.f32 %v1702_v20  ;;  %v1664_v21 = vsub.f32 %v3885_v8, %v1586_v35  ;;  %1765 = vadd.xlane.f32.xlu0 %v1764_v19  ;;  %2038 = vmatprep.mubr.f32.mxu1 %v3269_v47  ;;  %v475_v35 = vld [vmem:[%s4364_s7 + $0xa0] sm:$0xff]  ;;  %v476_v19 = vld [vmem:[%s4364_s7 + $0xa8] sm:$0xff] }
 0x30b   : > { %2891 = vmatprep.subr.bf16.mxu0 %v3270_v49 }
 0x30c   : > { %v3045_v9 = vpop.eup %3044  ;;  %v1704_v22 = vmul.f32 1.442695, %v1664_v21 }
 0x30d   : > { %v1589_v10 = vpop.xlane.xlu1 %1588  ;;  %2717 = vmatmul.mubr.msk.f32.gmra.mrb[106].mxu1 %vm1559_vm1, %v3045_v9  ;;  %v1767_v31 = vsel %vm1559_vm1, %v3045_v9, 0.0  ;;  %2893 = vmatpush1.bf16.msra.mxu0 %v2892_v32  ;;  %v479_v32 = vld [vmem:[%s4364_s7 + $0xc0] sm:$0xff] }
 0x30e   : > { %3050 = vpow2.f32 %v1704_v22  ;;  %v1665_v8 = vsub.f32 %v3889_v61, %v1589_v10  ;;  %1768 = vadd.xlane.f32.xlu1 %v1767_v31  ;;  %2044 = vmatprep.mubr.f32.mxu1 %v3269_v47  ;;  %v2898_v22 = vpack.c.bf16 %v476_v19, %v475_v35 }
 0x30f   : > { %2894 = vmatprep.subr.bf16.mxu0 %v3270_v49 }
 0x310   : > { %v3047_v1 = vpop.eup %3046  ;;  %v1706_v33 = vmul.f32 1.442695, %v1665_v8  ;;  %v477_v8 = vld [vmem:[%s4364_s7 + $0xb0] sm:$0xff] }
 0x311   : > { %v1592_v5 = vpop.xlane.xlu0 %1591  ;;  %2718 = vmatmul.mubr.msk.f32.gmra.mrb[108].mxu1 %vm1559_vm1, %v3047_v1  ;;  %v1770_v39 = vsel %vm1559_vm1, %v3047_v1, 0.0  ;;  %2896 = vmatpush1.bf16.msra.mxu0 %v2895_v18  ;;  %v478_v1 = vld [vmem:[%s4364_s7 + $0xb8] sm:$0xff] }
 0x312   : > { %3052 = vpow2.f32 %v1706_v33  ;;  %v1666_v40 = vsub.f32 %v3893_v63, %v1592_v5  ;;  %1771 = vadd.xlane.f32.xlu0 %v1770_v39  ;;  %2050 = vmatprep.mubr.f32.mxu1 %v3269_v47  ;;  %v2901_v5 = vpack.c.bf16 %v478_v1, %v477_v8 }
 0x313   : > { %2897 = vmatprep.subr.bf16.mxu0 %v3270_v49 }
 0x314   : > { %v3049_v61 = vpop.eup %3048  ;;  %v1708_v29 = vmul.f32 1.442695, %v1666_v40 }
 0x315   : > { %v1595_v3 = vpop.xlane.xlu1 %1594  ;;  %2719 = vmatmul.mubr.msk.f32.gmra.mrb[110].mxu1 %vm1559_vm1, %v3049_v61  ;;  %v1773_v30 = vsel %vm1559_vm1, %v3049_v61, 0.0  ;;  %2899 = vmatpush1.bf16.msra.mxu0 %v2898_v22 }
 0x316   : > { %3054 = vpow2.f32 %v1708_v29  ;;  %v1667_v63 = vsub.f32 %v3897_v28, %v1595_v3  ;;  %1774 = vadd.xlane.f32.xlu1 %v1773_v30  ;;  %2056 = vmatprep.mubr.f32.mxu1 %v3269_v47 }
 0x317   : > { %2900 = vmatprep.subr.bf16.mxu0 %v3270_v49 }
 0x318   : > { %v3051_v43 = vpop.eup %3050  ;;  %v1710_v44 = vmul.f32 1.442695, %v1667_v63 }
 0x319   : > { %v1598_v45 = vpop.xlane.xlu0 %1597  ;;  %2720 = vmatmul.mubr.msk.f32.gmra.mrb[112].mxu1 %vm1559_vm1, %v3051_v43  ;;  %v1776_v4 = vsel %vm1559_vm1, %v3051_v43, 0.0  ;;  %2902 = vmatpush1.bf16.msra.mxu0 %v2901_v5 }
 0x31a   : > { %3056 = vpow2.f32 %v1710_v44  ;;  %v1668_v46 = vsub.f32 %v3901_v0, %v1598_v45  ;;  %1777 = vadd.xlane.f32.xlu0 %v1776_v4  ;;  %2062 = vmatprep.mubr.f32.mxu1 %v3269_v47 }
 0x31b   : > { %2903 = vmatprep.subr.bf16.mxu0 %v3270_v49 }
 0x31c   : > { %v3053_v28 = vpop.eup %3052  ;;  %v1712_v53 = vmul.f32 1.442695, %v1668_v46 }
 0x31d   : > { %v1601_v50 = vpop.xlane.xlu1 %1600  ;;  %2721 = vmatmul.mubr.msk.f32.gmra.mrb[114].mxu1 %vm1559_vm1, %v3053_v28  ;;  %v1779_v17 = vsel %vm1559_vm1, %v3053_v28, 0.0 }
 0x31e   : > { %3058 = vpow2.f32 %v1712_v53  ;;  %v1669_v0 = vsub.f32 %v3905_v24, %v1601_v50  ;;  %1780 = vadd.xlane.f32.xlu1 %v1779_v17  ;;  %2068 = vmatprep.mubr.f32.mxu1 %v3269_v47 }
 0x320   : > { %v3055_v6 = vpop.eup %3054  ;;  %v1714_v54 = vmul.f32 1.442695, %v1669_v0 }
 0x321   : > { %v1604_v7 = vpop.xlane.xlu0 %1603  ;;  %2722 = vmatmul.mubr.msk.f32.gmra.mrb[116].mxu1 %vm1559_vm1, %v3055_v6  ;;  %v1782_v56 = vsel %vm1559_vm1, %v3055_v6, 0.0 }
 0x322   : > { %3060 = vpow2.f32 %v1714_v54  ;;  %v1670_v59 = vsub.f32 %v3909_v26, %v1604_v7  ;;  %1783 = vadd.xlane.f32.xlu0 %v1782_v56  ;;  %2074 = vmatprep.mubr.f32.mxu1 %v3269_v47 }
 0x324   : > { %v3057_v24 = vpop.eup %3056  ;;  %v1716_v20 = vmul.f32 1.442695, %v1670_v59 }
 0x325   : > { %v1607_v21 = vpop.xlane.xlu1 %1606  ;;  %2723 = vmatmul.mubr.msk.f32.gmra.mrb[118].mxu1 %vm1559_vm1, %v3057_v24  ;;  %v1785_v9 = vsel %vm1559_vm1, %v3057_v24, 0.0 }
 0x326   : > { %3062 = vpow2.f32 %v1716_v20  ;;  %v1671_v26 = vsub.f32 %v3913_v12, %v1607_v21  ;;  %1786 = vadd.xlane.f32.xlu1 %v1785_v9  ;;  %2080 = vmatprep.mubr.f32.mxu1 %v3269_v47  ;;  %v484_v20 = vld [vmem:[%s4364_s7 + $0xe8] sm:$0xff] }
 0x328   : > { %v3059_v58 = vpop.eup %3058  ;;  %v1718_v25 = vmul.f32 1.442695, %v1671_v26 }
 0x329   : > { %2724 = vmatmul.mubr.msk.f32.gmra.mrb[120].mxu1 %vm1559_vm1, %v3059_v58  ;;  %v1788_v10 = vsel %vm1559_vm1, %v3059_v58, 0.0 }
 0x32a   : > { %3064 = vpow2.f32 %v1718_v25  ;;  %1789 = vadd.xlane.f32.xlu0 %v1788_v10  ;;  %2086 = vmatprep.mubr.f32.mxu1 %v3269_v47 }
 0x32b   : > { %v1610_v31 = vpop.xlane.xlu0 %1609 }
 0x32c   : > { %v3061_v48 = vpop.eup %3060  ;;  %v1672_v12 = vsub.f32 %v3917_v2, %v1610_v31  ;;  %v485_v31 = vld [vmem:[%s4364_s7 + $0xf0] sm:$0xff] }
 0x32d   : > { %2725 = vmatmul.mubr.msk.f32.gmra.mrb[122].mxu1 %vm1559_vm1, %v3061_v48  ;;  %v1791_v33 = vsel %vm1559_vm1, %v3061_v48, 0.0 }
 0x32e   : > { %v1720_v39 = vmul.f32 1.442695, %v1672_v12  ;;  %1792 = vadd.xlane.f32.xlu1 %v1791_v33  ;;  %2092 = vmatprep.mubr.f32.mxu1 %v3269_v47 }
 0x32f   : > { %v1613_v40 = vpop.xlane.xlu1 %1612 }
 0x330   : > { %v3063_v2 = vpop.eup %3062  ;;  %3066 = vpow2.f32 %v1720_v39  ;;  %v1673_v61 = vsub.f32 %v3921_v41, %v1613_v40  ;;  %v480_v41 = vld [vmem:[%s4364_s7 + $0xc8] sm:$0xff] }
 0x331   : > { %2726 = vmatmul.mubr.msk.f32.gmra.mrb[124].mxu1 %vm1559_vm1, %v3063_v2  ;;  %v1794_v29 = vsel %vm1559_vm1, %v3063_v2, 0.0  ;;  %v2904_v43 = vpack.c.bf16 %v480_v41, %v479_v32 }
 0x332   : > { %v1722_v51 = vmul.f32 1.442695, %v1673_v61  ;;  %1795 = vadd.xlane.f32.xlu0 %v1794_v29  ;;  %2098 = vmatprep.mubr.f32.mxu1 %v3269_v47 }
 0x333   : > { %v1616_v13 = vpop.xlane.xlu0 %1615  ;;  %2905 = vmatpush1.bf16.msra.mxu0 %v2904_v43 }
 0x334   : > { %v3065_v3 = vpop.eup %3064  ;;  %3068 = vpow2.f32 %v1722_v51  ;;  %v1674_v30 = vsub.f32 %v3925_v42, %v1616_v13  ;;  %2906 = vmatprep.subr.bf16.mxu0 %v3270_v49 }
 0x335   : > { %2727 = vmatmul.mubr.msk.f32.gmra.mrb[126].mxu1 %vm1559_vm1, %v3065_v3  ;;  %v1797_v63 = vsel %vm1559_vm1, %v3065_v3, 0.0 }
 0x336   : > { %v1724_v44 = vmul.f32 1.442695, %v1674_v30  ;;  %1798 = vadd.xlane.f32.xlu1 %v1797_v63  ;;  %2104 = vmatprep.mubr.f32.mxu1 %v3269_v47 }
 0x337   : > { %v1619_v45 = vpop.xlane.xlu1 %1618 }
 0x338   : > { %3070 = vpow2.f32 %v1724_v44  ;;  %v1675_v42 = vsub.f32 %v3929_v14, %v1619_v45  ;;  %v482_v14 = vld [vmem:[%s4364_s7 + $0xd8] sm:$0xff] }
 0x339   : > { %v2907_v50 = vpack.c.bf16 %v482_v14, %v481_v38 }
 0x33a   : > { %v3067_v4 = vpop.eup %3066  ;;  %v1726_v46 = vmul.f32 1.442695, %v1675_v42 }
 0x33b   : > { %2728 = vmatmul.mubr.msk.f32.gmra.mrb[128].mxu1 %vm1559_vm1, %v3067_v4  ;;  %v1622_v28 = vpop.xlane.xlu0 %1621  ;;  %v1800_v53 = vsel %vm1559_vm1, %v3067_v4, 0.0  ;;  %2908 = vmatpush1.bf16.msra.mxu0 %v2907_v50 }
 0x33c   : > { %3072 = vpow2.f32 %v1726_v46  ;;  %v1676_v36 = vsub.f32 %v3933_v15, %v1622_v28  ;;  %1801 = vadd.xlane.f32.xlu0 %v1800_v53  ;;  %2110 = vmatprep.mubr.f32.mxu1 %v3269_v47 }
 0x33d   : > { %2909 = vmatprep.subr.bf16.mxu0 %v3270_v49 }
 0x33e   : > { %v3069_v17 = vpop.eup %3068  ;;  %v1728_v18 = vmul.f32 1.442695, %v1676_v36 }
 0x33f   : > { %2729 = vmatmul.mubr.msk.f32.gmra.mrb[130].mxu1 %vm1559_vm1, %v3069_v17  ;;  %v1625_v0 = vpop.xlane.xlu1 %1624  ;;  %v1803_v6 = vsel %vm1559_vm1, %v3069_v17, 0.0 }
 0x340   : > { %3074 = vpow2.f32 %v1728_v18  ;;  %v1677_v15 = vsub.f32 %v3937_v37, %v1625_v0  ;;  %1804 = vadd.xlane.f32.xlu1 %v1803_v6  ;;  %2116 = vmatprep.mubr.f32.mxu1 %v3269_v47  ;;  %v483_v37 = vld [vmem:[%s4364_s7 + $0xe0] sm:$0xff] }
 0x341   : > { %v2910_v35 = vpack.c.bf16 %v484_v20, %v483_v37  ;;  %v3163_v20 = vld [vmem:[%s3372_s29] sm:$0xff] }
 0x342   : > { %v3071_v54 = vpop.eup %3070  ;;  %v1730_v7 = vmul.f32 1.442695, %v1677_v15 }
 0x343   : > { %2730 = vmatmul.mubr.msk.f32.gmra.mrb[132].mxu1 %vm1559_vm1, %v3071_v54  ;;  %v1628_v56 = vpop.xlane.xlu0 %1627  ;;  %v1806_v59 = vsel %vm1559_vm1, %v3071_v54, 0.0  ;;  %2911 = vmatpush1.bf16.msra.mxu0 %v2910_v35 }
 0x344   : > { %3076 = vpow2.f32 %v1730_v7  ;;  %v1678_v24 = vsub.f32 %v3941_v16, %v1628_v56  ;;  %1807 = vadd.xlane.f32.xlu0 %v1806_v59  ;;  %2122 = vmatprep.mubr.f32.mxu1 %v3269_v47 }
 0x345   : > { %2912 = vmatprep.subr.bf16.mxu0 %v3270_v49 }
 0x346   : > { %v3073_v19 = vpop.eup %3072  ;;  %v1732_v21 = vmul.f32 1.442695, %v1678_v24  ;;  %v3162_v24 = vld [vmem:[%s3372_s29 + $0x8] sm:$0xff] }
 0x347   : > { %2731 = vmatmul.mubr.msk.f32.gmra.mrb[134].mxu1 %vm1559_vm1, %v3073_v19  ;;  %v1631_v9 = vpop.xlane.xlu1 %1630  ;;  %v1809_v22 = vsel %vm1559_vm1, %v3073_v19, 0.0 }
 0x348   : > { %3078 = vpow2.f32 %v1732_v21  ;;  %v1679_v16 = vsub.f32 %v3945_v52, %v1631_v9  ;;  %1810 = vadd.xlane.f32.xlu1 %v1809_v22  ;;  %2128 = vmatprep.mubr.f32.mxu1 %v3269_v47  ;;  %v486_v52 = vld [vmem:[%s4364_s7 + $0xf8] sm:$0xff]  ;;  %v3165_v22 = vld [vmem:[%s3372_s29 + $0x10] sm:$0xff] }
 0x349   : > { %v2913_v49 = vpack.c.bf16 %v486_v52, %v485_v31  ;;  %v3167_v31 = vld [vmem:[%s3372_s29 + $0x20] sm:$0xff] }
 0x34a   : > { %v3075_v26 = vpop.eup %3074  ;;  %v1734_v58 = vmul.f32 1.442695, %v1679_v16 }
 0x34b   : > { %2732 = vmatmul.mubr.msk.f32.gmra.mrb[136].mxu1 %vm1559_vm1, %v3075_v26  ;;  %v1634_v25 = vpop.xlane.xlu0 %1633  ;;  %v1812_v10 = vsel %vm1559_vm1, %v3075_v26, 0.0  ;;  %2914 = vmatpush1.bf16.msra.mxu0 %v2913_v49 }
 0x34c   : > { %3080 = vpow2.f32 %v1734_v58  ;;  %v1680_v48 = vsub.f32 %v3949_v55, %v1634_v25  ;;  %1813 = vadd.xlane.f32.xlu0 %v1812_v10  ;;  %2134 = vmatprep.mubr.f32.mxu1 %v3269_v47  ;;  %v3166_v25 = vld [vmem:[%s3372_s29 + $0x28] sm:$0xff] }
 0x34e   : > { %v3077_v12 = vpop.eup %3076  ;;  %v1736_v8 = vmul.f32 1.442695, %v1680_v48 }
 0x34f   : > { %2733 = vmatmul.mubr.msk.f32.gmra.mrb[138].mxu1 %vm1559_vm1, %v3077_v12  ;;  %v1637_v1 = vpop.xlane.xlu1 %1636  ;;  %v1815_v33 = vsel %vm1559_vm1, %v3077_v12, 0.0  ;;  %v3168_v12 = vld [vmem:[%s3372_s29 + $0x38] sm:$0xff] }
 0x350   : > { %3082 = vpow2.f32 %v1736_v8  ;;  %v1681_v5 = vsub.f32 %v3953_v57, %v1637_v1  ;;  %1816 = vadd.xlane.f32.xlu1 %v1815_v33  ;;  %2140 = vmatprep.mubr.f32.mxu1 %v3269_v47  ;;  %v3169_v1 = vld [vmem:[%s3372_s29 + $0x30] sm:$0xff] }
 0x352   : > { %v3079_v39 = vpop.eup %3078  ;;  %v1738_v55 = vmul.f32 1.442695, %v1681_v5 }
 0x353   : > { %2734 = vmatmul.mubr.msk.f32.gmra.mrb[140].mxu1 %vm1559_vm1, %v3079_v39  ;;  %v1640_v40 = vpop.xlane.xlu0 %1639  ;;  %v1818_v2 = vsel %vm1559_vm1, %v3079_v39, 0.0 }
 0x354   : > { %3084 = vpow2.f32 %v1738_v55  ;;  %v1682_v61 = vsub.f32 %v3957_v60, %v1640_v40  ;;  %1819 = vadd.xlane.f32.xlu0 %v1818_v2  ;;  %2146 = vmatprep.mubr.f32.mxu1 %v3269_v47  ;;  %v3170_v55 = vld [vmem:[%s3372_s29 + $0x48] sm:$0xff]  ;;  %v3171_v2 = vld [vmem:[%s3372_s29 + $0x40] sm:$0xff] }
 0x356   : > { %v3081_v29 = vpop.eup %3080  ;;  %v1740_v51 = vmul.f32 1.442695, %v1682_v61 }
 0x357   : > { %2735 = vmatmul.mubr.msk.f32.gmra.mrb[142].mxu1 %vm1559_vm1, %v3081_v29  ;;  %v1643_v57 = vpop.xlane.xlu1 %1642  ;;  %v1821_v13 = vsel %vm1559_vm1, %v3081_v29, 0.0 }
 0x358   : > { %3086 = vpow2.f32 %v1740_v51  ;;  %v1683_v3 = vsub.f32 %v3961_v62, %v1643_v57  ;;  %1822 = vadd.xlane.f32.xlu1 %v1821_v13  ;;  %2152 = vmatprep.mubr.f32.mxu1 %v3269_v47  ;;  %v3172_v57 = vld [vmem:[%s3372_s29 + $0x58] sm:$0xff] }
 0x35a   : > { %v3083_v30 = vpop.eup %3082  ;;  %v1742_v32 = vmul.f32 1.442695, %v1683_v3  ;;  %v3173_v3 = vld [vmem:[%s3372_s29 + $0x50] sm:$0xff] }
 0x35b   : > { %2736 = vmatmul.mubr.msk.f32.gmra.mrb[144].mxu1 %vm1559_vm1, %v3083_v30  ;;  %v1646_v60 = vpop.xlane.xlu0 %1645  ;;  %v1824_v41 = vsel %vm1559_vm1, %v3083_v30, 0.0 }
 0x35c   : > { %3088 = vpow2.f32 %v1742_v32  ;;  %v1684_v63 = vsub.f32 %v3965_v23, %v1646_v60  ;;  %1825 = vadd.xlane.f32.xlu0 %v1824_v41  ;;  %2158 = vmatprep.mubr.f32.mxu1 %v3269_v47  ;;  %v3174_v41 = vld [vmem:[%s3372_s29 + $0x68] sm:$0xff] }
 0x35e   : > { %v3085_v43 = vpop.eup %3084  ;;  %v1744_v44 = vmul.f32 1.442695, %v1684_v63 }
 0x35f   : > { %2737 = vmatmul.mubr.msk.f32.gmra.mrb[146].mxu1 %vm1559_vm1, %v3085_v43  ;;  %v1649_v62 = vpop.xlane.xlu1 %1648  ;;  %v1827_v45 = vsel %vm1559_vm1, %v3085_v43, 0.0  ;;  %v3175_v43 = vld [vmem:[%s3372_s29 + $0x60] sm:$0xff] }
 0x360   : > { %3090 = vpow2.f32 %v1744_v44  ;;  %v1685_v42 = vsub.f32 %v3969_v11, %v1649_v62  ;;  %1828 = vadd.xlane.f32.xlu1 %v1827_v45  ;;  %2164 = vmatprep.mubr.f32.mxu1 %v3269_v47 }
 0x362   : > { %v3087_v4 = vpop.eup %3086  ;;  %v1746_v46 = vmul.f32 1.442695, %v1685_v42  ;;  %v3176_v42 = vld [vmem:[%s3372_s29 + $0x78] sm:$0xff] }
 0x363   : > { %2738 = vmatmul.mubr.msk.f32.gmra.mrb[148].mxu1 %vm1559_vm1, %v3087_v4  ;;  %v1652_v23 = vpop.xlane.xlu0 %1651  ;;  %v1830_v28 = vsel %vm1559_vm1, %v3087_v4, 0.0 }
 0x364   : > { %3092 = vpow2.f32 %v1746_v46  ;;  %v1686_v53 = vsub.f32 %v3973_v34, %v1652_v23  ;;  %1831 = vadd.xlane.f32.xlu0 %v1830_v28  ;;  %2170 = vmatprep.mubr.f32.mxu1 %v3269_v47  ;;  %v3177_v46 = vld [vmem:[%s3372_s29 + $0x70] sm:$0xff] }
 0x366   : > { %v3089_v36 = vpop.eup %3088  ;;  %v1748_v38 = vmul.f32 1.442695, %v1686_v53 }
 0x367   : > { %2739 = vmatmul.mubr.msk.f32.gmra.mrb[150].mxu1 %vm1559_vm1, %v3089_v36  ;;  %v1655_v11 = vpop.xlane.xlu1 %1654  ;;  %v1833_v14 = vsel %vm1559_vm1, %v3089_v36, 0.0  ;;  %v3178_v36 = vld [vmem:[%s3372_s29 + $0x88] sm:$0xff] }
 0x368   : > { %3094 = vpow2.f32 %v1748_v38  ;;  %v1687_v50 = vsub.f32 %v3977_v27, %v1655_v11  ;;  %1834 = vadd.xlane.f32.xlu1 %v1833_v14  ;;  %2176 = vmatprep.mubr.f32.mxu1 %v3269_v47  ;;  %v3179_v11 = vld [vmem:[%s3372_s29 + $0x80] sm:$0xff] }
 0x36a   : > { %v3091_v17 = vpop.eup %3090  ;;  %v1750_v18 = vmul.f32 1.442695, %v1687_v50 }
 0x36b   : > { %2740 = vmatmul.mubr.msk.f32.gmra.mrb[152].mxu1 %vm1559_vm1, %v3091_v17  ;;  %v1836_v34 = vsel %vm1559_vm1, %v3091_v17, 0.0 }
 0x36c   : > { %3096 = vpow2.f32 %v1750_v18  ;;  %1837 = vadd.xlane.f32.xlu0 %v1836_v34  ;;  %2182 = vmatprep.mubr.f32.mxu1 %v3269_v47  ;;  %v3180_v18 = vld [vmem:[%s3372_s29 + $0x98] sm:$0xff] }
 0x36e   : > { %v3093_v0 = vpop.eup %3092 }
 0x36f   : > { %2741 = vmatmul.mubr.msk.f32.gmra.mrb[154].mxu1 %vm1559_vm1, %v3093_v0  ;;  %v1839_v6 = vsel %vm1559_vm1, %v3093_v0, 0.0  ;;  %v3181_v0 = vld [vmem:[%s3372_s29 + $0x90] sm:$0xff] }
 0x370   : > { %1840 = vadd.xlane.f32.xlu1 %v1839_v6  ;;  %2188 = vmatprep.mubr.f32.mxu1 %v3269_v47 }
 0x372   : > { %v3095_v27 = vpop.eup %3094 }
 0x373   : > { %2742 = vmatmul.mubr.msk.f32.gmra.mrb[156].mxu1 %vm1559_vm1, %v3095_v27  ;;  %v1842_v15 = vsel %vm1559_vm1, %v3095_v27, 0.0 }
 0x374   : > { %1843 = vadd.xlane.f32.xlu0 %v1842_v15  ;;  %2194 = vmatprep.mubr.f32.mxu1 %v3269_v47  ;;  %v3164_v47 = vld [vmem:[%s3372_s29 + $0x18] sm:$0xff] }
 0x376   : > { %v3097_v54 = vpop.eup %3096 }
 0x377   : > { %2743 = vmatmul.mubr.msk.f32.gmra.mrb[158].mxu1 %vm1559_vm1, %v3097_v54  ;;  %v1845_v7 = vsel %vm1559_vm1, %v3097_v54, 0.0  ;;  %v3182_v54 = vld [vmem:[%s3372_s29 + $0xa8] sm:$0xff] }
 0x378   : > { %1846 = vadd.xlane.f32.xlu1 %v1845_v7 }
 0x3cc   : > { %v2010_v56 = vpop.f32.mrb[96].mxu1 }
 0x3cd   : > { %v2012_v59 = vpop.f32.mrb[97].mxu1  ;;  %v2201_v35 = vmul.f32 %v3163_v20, %v2010_v56  ;;  %v3183_v56 = vld [vmem:[%s3372_s29 + $0xa0] sm:$0xff]  ;;  %v3184_v20 = vld [vmem:[%s3372_s29 + $0xb8] sm:$0xff] }
 0x3ce   : > { %v2202_v37 = vmul.f32 %v3162_v24, %v2012_v59 }
 0x3d0   : > { %v2016_v19 = vpop.f32.mrb[98].mxu1  ;;  %2329 = vmatprep.mubr.f32.mxu0 %v2202_v37 }
 0x3d1   : > { %v2018_v21 = vpop.f32.mrb[99].mxu1  ;;  %2330 = vmatmul.mubr.f32.vlgmr.msra.gmra.mrb[64].mxu0 %v2201_v35  ;;  %v2203_v16 = vmul.f32 %v3165_v22, %v2016_v19  ;;  %v3185_v19 = vld [vmem:[%s3372_s29 + $0xb0] sm:$0xff]  ;;  %v3186_v22 = vld [vmem:[%s3372_s29 + $0xc8] sm:$0xff] }
 0x3d2   : > { %v2204_v9 = vmul.f32 %v3164_v47, %v2018_v21 }
 0x3d4   : > { %v2022_v26 = vpop.f32.mrb[100].mxu1  ;;  %2334 = vmatprep.mubr.f32.mxu0 %v2204_v9 }
 0x3d5   : > { %v2024_v58 = vpop.f32.mrb[101].mxu1  ;;  %2335 = vmatmul.mubr.f32.gmra.mrb[66].mxu0 %v2203_v16  ;;  %v2205_v52 = vmul.f32 %v3167_v31, %v2022_v26  ;;  %v3187_v26 = vld [vmem:[%s3372_s29 + $0xc0] sm:$0xff]  ;;  %v3188_v31 = vld [vmem:[%s3372_s29 + $0xd8] sm:$0xff] }
 0x3d6   : > { %v2206_v10 = vmul.f32 %v3166_v25, %v2024_v58 }
 0x3d8   : > { %v2028_v48 = vpop.f32.mrb[102].mxu1  ;;  %2339 = vmatprep.mubr.f32.mxu0 %v2206_v10 }
 0x3d9   : > { %v2030_v49 = vpop.f32.mrb[103].mxu1  ;;  %2340 = vmatmul.mubr.f32.gmra.mrb[68].mxu0 %v2205_v52  ;;  %v2207_v33 = vmul.f32 %v3169_v1, %v2028_v48  ;;  %v3189_v48 = vld [vmem:[%s3372_s29 + $0xd0] sm:$0xff]  ;;  %v3190_v1 = vld [vmem:[%s3372_s29 + $0xe8] sm:$0xff] }
 0x3da   : > { %v2208_v8 = vmul.f32 %v3168_v12, %v2030_v49 }
 0x3dc   : > { %v2034_v5 = vpop.f32.mrb[104].mxu1  ;;  %2344 = vmatprep.mubr.f32.mxu0 %v2208_v8 }
 0x3dd   : > { %v2036_v39 = vpop.f32.mrb[105].mxu1  ;;  %2345 = vmatmul.mubr.f32.gmra.mrb[70].mxu0 %v2207_v33  ;;  %v2209_v61 = vmul.f32 %v3171_v2, %v2034_v5  ;;  %v3191_v5 = vld [vmem:[%s3372_s29 + $0xe0] sm:$0xff]  ;;  %v3192_v2 = vld [vmem:[%s3372_s29 + $0xf8] sm:$0xff] }
 0x3de   : > { %v2210_v40 = vmul.f32 %v3170_v55, %v2036_v39 }
 0x3e0   : > { %v2040_v29 = vpop.f32.mrb[106].mxu1  ;;  %2349 = vmatprep.mubr.f32.mxu0 %v2210_v40 }
 0x3e1   : > { %v2042_v51 = vpop.f32.mrb[107].mxu1  ;;  %2350 = vmatmul.mubr.f32.gmra.mrb[72].mxu0 %v2209_v61  ;;  %v2211_v30 = vmul.f32 %v3173_v3, %v2040_v29  ;;  %v3193_v29 = vld [vmem:[%s3372_s29 + $0xf0] sm:$0xff]  ;;  %v3194_v3 = vld [vmem:[%s3372_s29 + $0x108] sm:$0xff] }
 0x3e2   : > { %v2212_v13 = vmul.f32 %v3172_v57, %v2042_v51 }
 0x3e4   : > { %v2046_v32 = vpop.f32.mrb[108].mxu1  ;;  %2354 = vmatprep.mubr.f32.mxu0 %v2212_v13 }
 0x3e5   : > { %v2048_v60 = vpop.f32.mrb[109].mxu1  ;;  %2355 = vmatmul.mubr.f32.gmra.mrb[74].mxu0 %v2211_v30  ;;  %v2213_v44 = vmul.f32 %v3175_v43, %v2046_v32  ;;  %v3195_v32 = vld [vmem:[%s3372_s29 + $0x100] sm:$0xff]  ;;  %v3196_v43 = vld [vmem:[%s3372_s29 + $0x118] sm:$0xff] }
 0x3e6   : > { %v2214_v63 = vmul.f32 %v3174_v41, %v2048_v60 }
 0x3e8   : > { %v2052_v62 = vpop.f32.mrb[110].mxu1  ;;  %2359 = vmatprep.mubr.f32.mxu0 %v2214_v63 }
 0x3e9   : > { %v2054_v45 = vpop.f32.mrb[111].mxu1  ;;  %2360 = vmatmul.mubr.f32.gmra.mrb[76].mxu0 %v2213_v44  ;;  %v2215_v23 = vmul.f32 %v3177_v46, %v2052_v62  ;;  %v3197_v62 = vld [vmem:[%s3372_s29 + $0x110] sm:$0xff]  ;;  %v3198_v46 = vld [vmem:[%s3372_s29 + $0x128] sm:$0xff] }
 0x3ea   : > { %v2216_v4 = vmul.f32 %v3176_v42, %v2054_v45 }
 0x3ec   : > { %v2058_v28 = vpop.f32.mrb[112].mxu1  ;;  %2364 = vmatprep.mubr.f32.mxu0 %v2216_v4 }
 0x3ed   : > { %v2060_v53 = vpop.f32.mrb[113].mxu1  ;;  %2365 = vmatmul.mubr.f32.gmra.mrb[78].mxu0 %v2215_v23  ;;  %v2217_v14 = vmul.f32 %v3179_v11, %v2058_v28  ;;  %v3199_v28 = vld [vmem:[%s3372_s29 + $0x120] sm:$0xff]  ;;  %v3200_v11 = vld [vmem:[%s3372_s29 + $0x138] sm:$0xff] }
 0x3ee   : > { %v2218_v38 = vmul.f32 %v3178_v36, %v2060_v53 }
 0x3f0   : > { %v2064_v50 = vpop.f32.mrb[114].mxu1  ;;  %2369 = vmatprep.mubr.f32.mxu0 %v2218_v38 }
 0x3f1   : > { %v2066_v17 = vpop.f32.mrb[115].mxu1  ;;  %2370 = vmatmul.mubr.f32.gmra.mrb[80].mxu0 %v2217_v14  ;;  %v2219_v6 = vmul.f32 %v3181_v0, %v2064_v50  ;;  %v3201_v50 = vld [vmem:[%s3372_s29 + $0x130] sm:$0xff]  ;;  %v3202_v0 = vld [vmem:[%s3372_s29 + $0x148] sm:$0xff] }
 0x3f2   : > { %v2220_v34 = vmul.f32 %v3180_v18, %v2066_v17 }
 0x3f4   : > { %v2070_v27 = vpop.f32.mrb[116].mxu1  ;;  %2374 = vmatprep.mubr.f32.mxu0 %v2220_v34 }
 0x3f5   : > { %v2072_v15 = vpop.f32.mrb[117].mxu1  ;;  %2375 = vmatmul.mubr.f32.gmra.mrb[82].mxu0 %v2219_v6  ;;  %v2221_v59 = vmul.f32 %v3183_v56, %v2070_v27  ;;  %v3203_v27 = vld [vmem:[%s3372_s29 + $0x140] sm:$0xff]  ;;  %v3204_v56 = vld [vmem:[%s3372_s29 + $0x158] sm:$0xff] }
 0x3f6   : > { %v2222_v7 = vmul.f32 %v3182_v54, %v2072_v15 }
 0x3f8   : > { %v2076_v24 = vpop.f32.mrb[118].mxu1  ;;  %2379 = vmatprep.mubr.f32.mxu0 %v2222_v7 }
 0x3f9   : > { %v2078_v37 = vpop.f32.mrb[119].mxu1  ;;  %2380 = vmatmul.mubr.f32.gmra.mrb[84].mxu0 %v2221_v59  ;;  %v2223_v21 = vmul.f32 %v3185_v19, %v2076_v24  ;;  %v3205_v24 = vld [vmem:[%s3372_s29 + $0x150] sm:$0xff]  ;;  %v3206_v19 = vld [vmem:[%s3372_s29 + $0x168] sm:$0xff] }
 0x3fa   : > { %v2224_v35 = vmul.f32 %v3184_v20, %v2078_v37 }
 0x3fc   : > { %v2082_v47 = vpop.f32.mrb[120].mxu1  ;;  %2384 = vmatprep.mubr.f32.mxu0 %v2224_v35 }
 0x3fd   : > { %v2084_v9 = vpop.f32.mrb[121].mxu1  ;;  %2385 = vmatmul.mubr.f32.gmra.mrb[86].mxu0 %v2223_v21  ;;  %v2225_v58 = vmul.f32 %v3187_v26, %v2082_v47  ;;  %v3207_v47 = vld [vmem:[%s3372_s29 + $0x160] sm:$0xff]  ;;  %v3208_v26 = vld [vmem:[%s3372_s29 + $0x178] sm:$0xff] }
 0x3fe   : > { %v2226_v16 = vmul.f32 %v3186_v22, %v2084_v9 }
 0x400   : > { %v2088_v25 = vpop.f32.mrb[122].mxu1  ;;  %2389 = vmatprep.mubr.f32.mxu0 %v2226_v16 }
 0x401   : > { %v2090_v10 = vpop.f32.mrb[123].mxu1  ;;  %2390 = vmatmul.mubr.f32.gmra.mrb[88].mxu0 %v2225_v58  ;;  %v2227_v49 = vmul.f32 %v3189_v48, %v2088_v25  ;;  %v3209_v25 = vld [vmem:[%s3372_s29 + $0x170] sm:$0xff]  ;;  %v3210_v48 = vld [vmem:[%s3372_s29 + $0x188] sm:$0xff] }
 0x402   : > { %v2228_v52 = vmul.f32 %v3188_v31, %v2090_v10 }
 0x404   : > { %v2094_v12 = vpop.f32.mrb[124].mxu1  ;;  %2394 = vmatprep.mubr.f32.mxu0 %v2228_v52 }
 0x405   : > { %v2096_v8 = vpop.f32.mrb[125].mxu1  ;;  %2395 = vmatmul.mubr.f32.gmra.mrb[90].mxu0 %v2227_v49  ;;  %v2229_v39 = vmul.f32 %v3191_v5, %v2094_v12  ;;  %v3211_v12 = vld [vmem:[%s3372_s29 + $0x180] sm:$0xff]  ;;  %v3212_v5 = vld [vmem:[%s3372_s29 + $0x198] sm:$0xff] }
 0x406   : > { %v2230_v33 = vmul.f32 %v3190_v1, %v2096_v8 }
 0x408   : > { %v2100_v55 = vpop.f32.mrb[126].mxu1  ;;  %2399 = vmatprep.mubr.f32.mxu0 %v2230_v33 }
 0x409   : > { %v2102_v40 = vpop.f32.mrb[127].mxu1  ;;  %2400 = vmatmul.mubr.f32.gmra.mrb[92].mxu0 %v2229_v39  ;;  %v2231_v51 = vmul.f32 %v3193_v29, %v2100_v55  ;;  %v3213_v55 = vld [vmem:[%s3372_s29 + $0x190] sm:$0xff]  ;;  %v3214_v29 = vld [vmem:[%s3372_s29 + $0x1a8] sm:$0xff] }
 0x40a   : > { %v2232_v61 = vmul.f32 %v3192_v2, %v2102_v40 }
 0x40c   : > { %2404 = vmatprep.mubr.f32.mxu0 %v2232_v61 }
 0x40d   : > { %2405 = vmatmul.mubr.f32.gmra.mrb[94].mxu0 %v2231_v51 }
 0x40e   : > { %v2106_v57 = vpop.f32.mrb[128].mxu1 }
 0x40f   : > { %v2108_v13 = vpop.f32.mrb[129].mxu1  ;;  %v2233_v60 = vmul.f32 %v3195_v32, %v2106_v57  ;;  %v3215_v57 = vld [vmem:[%s3372_s29 + $0x1a0] sm:$0xff]  ;;  %v3216_v32 = vld [vmem:[%s3372_s29 + $0x1b8] sm:$0xff] }
 0x410   : > { %v2234_v30 = vmul.f32 %v3194_v3, %v2108_v13 }
 0x412   : > { %v2112_v41 = vpop.f32.mrb[130].mxu1  ;;  %2409 = vmatprep.mubr.f32.mxu0 %v2234_v30 }
 0x413   : > { %v2114_v63 = vpop.f32.mrb[131].mxu1  ;;  %2410 = vmatmul.mubr.f32.gmra.mrb[96].mxu0 %v2233_v60  ;;  %v2235_v45 = vmul.f32 %v3197_v62, %v2112_v41  ;;  %v3217_v41 = vld [vmem:[%s3372_s29 + $0x1b0] sm:$0xff]  ;;  %v3218_v62 = vld [vmem:[%s3372_s29 + $0x1c8] sm:$0xff] }
 0x414   : > { %v2236_v44 = vmul.f32 %v3196_v43, %v2114_v63 }
 0x416   : > { %v2118_v42 = vpop.f32.mrb[132].mxu1  ;;  %2414 = vmatprep.mubr.f32.mxu0 %v2236_v44 }
 0x417   : > { %v2120_v4 = vpop.f32.mrb[133].mxu1  ;;  %2415 = vmatmul.mubr.f32.gmra.mrb[98].mxu0 %v2235_v45  ;;  %v2237_v53 = vmul.f32 %v3199_v28, %v2118_v42  ;;  %v3219_v42 = vld [vmem:[%s3372_s29 + $0x1c0] sm:$0xff]  ;;  %v3220_v28 = vld [vmem:[%s3372_s29 + $0x1d8] sm:$0xff] }
 0x418   : > { %v2238_v23 = vmul.f32 %v3198_v46, %v2120_v4 }
 0x41a   : > { %v2124_v36 = vpop.f32.mrb[134].mxu1  ;;  %2419 = vmatprep.mubr.f32.mxu0 %v2238_v23 }
 0x41b   : > { %v2126_v38 = vpop.f32.mrb[135].mxu1  ;;  %2420 = vmatmul.mubr.f32.gmra.mrb[100].mxu0 %v2237_v53  ;;  %v2239_v17 = vmul.f32 %v3201_v50, %v2124_v36  ;;  %v3221_v36 = vld [vmem:[%s3372_s29 + $0x1d0] sm:$0xff]  ;;  %v3222_v50 = vld [vmem:[%s3372_s29 + $0x1e8] sm:$0xff] }
 0x41c   : > { %v2240_v14 = vmul.f32 %v3200_v11, %v2126_v38 }
 0x41e   : > { %v2130_v18 = vpop.f32.mrb[136].mxu1  ;;  %2424 = vmatprep.mubr.f32.mxu0 %v2240_v14 }
 0x41f   : > { %v2132_v34 = vpop.f32.mrb[137].mxu1  ;;  %2425 = vmatmul.mubr.f32.gmra.mrb[102].mxu0 %v2239_v17  ;;  %v2241_v15 = vmul.f32 %v3203_v27, %v2130_v18  ;;  %v3223_v18 = vld [vmem:[%s3372_s29 + $0x1e0] sm:$0xff]  ;;  %v3224_v27 = vld [vmem:[%s3372_s29 + $0x1f8] sm:$0xff] }
 0x420   : > { %v2242_v6 = vmul.f32 %v3202_v0, %v2132_v34 }
 0x422   : > { %v2136_v54 = vpop.f32.mrb[138].mxu1  ;;  %2429 = vmatprep.mubr.f32.mxu0 %v2242_v6 }
 0x423   : > { %v2138_v7 = vpop.f32.mrb[139].mxu1  ;;  %2430 = vmatmul.mubr.f32.gmra.mrb[104].mxu0 %v2241_v15  ;;  %v2243_v37 = vmul.f32 %v3205_v24, %v2136_v54  ;;  %v3225_v54 = vld [vmem:[%s3372_s29 + $0x1f0] sm:$0xff] }
 0x424   : > { %v2244_v59 = vmul.f32 %v3204_v56, %v2138_v7  ;;  %v1754_v56 = vpop.xlane.xlu0 %1753 }
 0x425   : > { %3098 = vrcp.f32 %v1754_v56 }
 0x426   : > { %v2142_v20 = vpop.f32.mrb[140].mxu1  ;;  %2434 = vmatprep.mubr.f32.mxu0 %v2244_v59  ;;  %v1757_v59 = vpop.xlane.xlu1 %1756 }
 0x427   : > { %v2144_v35 = vpop.f32.mrb[141].mxu1  ;;  %2435 = vmatmul.mubr.f32.gmra.mrb[106].mxu0 %v2243_v37  ;;  %v2245_v9 = vmul.f32 %v3207_v47, %v2142_v20  ;;  %3100 = vrcp.f32 %v1757_v59 }
 0x428   : > { %v2246_v21 = vmul.f32 %v3206_v19, %v2144_v35  ;;  %v1760_v24 = vpop.xlane.xlu0 %1759 }
 0x429   : > { %3102 = vrcp.f32 %v1760_v24 }
 0x42a   : > { %v2148_v22 = vpop.f32.mrb[142].mxu1  ;;  %2439 = vmatprep.mubr.f32.mxu0 %v2246_v21  ;;  %v1763_v37 = vpop.xlane.xlu1 %1762 }
 0x42b   : > { %v2150_v16 = vpop.f32.mrb[143].mxu1  ;;  %2440 = vmatmul.mubr.f32.gmra.mrb[108].mxu0 %v2245_v9  ;;  %v2247_v10 = vmul.f32 %v3209_v25, %v2148_v22  ;;  %3104 = vrcp.f32 %v1763_v37 }
 0x42c   : > { %v2248_v58 = vmul.f32 %v3208_v26, %v2150_v16  ;;  %v1766_v47 = vpop.xlane.xlu0 %1765 }
 0x42d   : > { %3106 = vrcp.f32 %v1766_v47 }
 0x42e   : > { %v2154_v31 = vpop.f32.mrb[144].mxu1  ;;  %2444 = vmatprep.mubr.f32.mxu0 %v2248_v58  ;;  %v1769_v58 = vpop.xlane.xlu1 %1768 }
 0x42f   : > { %v2156_v52 = vpop.f32.mrb[145].mxu1  ;;  %2445 = vmatmul.mubr.f32.gmra.mrb[110].mxu0 %v2247_v10  ;;  %v2249_v8 = vmul.f32 %v3211_v12, %v2154_v31  ;;  %v3099_v20 = vpop.eup %3098  ;;  %3108 = vrcp.f32 %v1769_v58 }
 0x430   : > { %v2250_v49 = vmul.f32 %v3210_v48, %v2156_v52  ;;  %v1772_v48 = vpop.xlane.xlu0 %1771 }
 0x431   : > { %v3101_v9 = vpop.eup %3100  ;;  %3110 = vrcp.f32 %v1772_v48 }
 0x432   : > { %v2160_v1 = vpop.f32.mrb[146].mxu1  ;;  %2449 = vmatprep.mubr.f32.mxu0 %v2250_v49 }
 0x433   : > { %v2162_v33 = vpop.f32.mrb[147].mxu1  ;;  %2450 = vmatmul.mubr.f32.gmra.mrb[112].mxu0 %v2249_v8  ;;  %v2251_v40 = vmul.f32 %v3213_v55, %v2160_v1  ;;  %v3103_v25 = vpop.eup %3102 }
 0x434   : > { %v2252_v39 = vmul.f32 %v3212_v5, %v2162_v33  ;;  %v1775_v33 = vpop.xlane.xlu1 %1774 }
 0x435   : > { %v3105_v49 = vpop.eup %3104  ;;  %3112 = vrcp.f32 %v1775_v33 }
 0x436   : > { %v2166_v2 = vpop.f32.mrb[148].mxu1  ;;  %2454 = vmatprep.mubr.f32.mxu0 %v2252_v39 }
 0x437   : > { %v2168_v61 = vpop.f32.mrb[149].mxu1  ;;  %2455 = vmatmul.mubr.f32.gmra.mrb[114].mxu0 %v2251_v40  ;;  %v2253_v13 = vmul.f32 %v3215_v57, %v2166_v2  ;;  %v3107_v5 = vpop.eup %3106 }
 0x438   : > { %v2254_v51 = vmul.f32 %v3214_v29, %v2168_v61  ;;  %v1778_v2 = vpop.xlane.xlu0 %1777 }
 0x439   : > { %v3109_v61 = vpop.eup %3108  ;;  %3114 = vrcp.f32 %v1778_v2 }
 0x43a   : > { %v2172_v3 = vpop.f32.mrb[150].mxu1  ;;  %2459 = vmatprep.mubr.f32.mxu0 %v2254_v51 }
 0x43b   : > { %v2174_v30 = vpop.f32.mrb[151].mxu1  ;;  %2460 = vmatmul.mubr.f32.gmra.mrb[116].mxu0 %v2253_v13  ;;  %v2255_v63 = vmul.f32 %v3217_v41, %v2172_v3  ;;  %v1781_v13 = vpop.xlane.xlu1 %1780 }
 0x43c   : > { %v2256_v60 = vmul.f32 %v3216_v32, %v2174_v30  ;;  %v3111_v3 = vpop.eup %3110  ;;  %3116 = vrcp.f32 %v1781_v13  ;;  %v1784_v41 = vpop.xlane.xlu0 %1783 }
 0x43d   : > { %3118 = vrcp.f32 %v1784_v41 }
 0x43e   : > { %v2178_v43 = vpop.f32.mrb[152].mxu1  ;;  %2464 = vmatprep.mubr.f32.mxu0 %v2256_v60 }
 0x43f   : > { %v2180_v44 = vpop.f32.mrb[153].mxu1  ;;  %2465 = vmatmul.mubr.f32.gmra.mrb[118].mxu0 %v2255_v63  ;;  %v2257_v4 = vmul.f32 %v3219_v42, %v2178_v43  ;;  %v3113_v63 = vpop.eup %3112 }
 0x440   : > { %v2258_v45 = vmul.f32 %v3218_v62, %v2180_v44 }
 0x442   : > { %v2184_v46 = vpop.f32.mrb[154].mxu1  ;;  %2469 = vmatprep.mubr.f32.mxu0 %v2258_v45  ;;  %v1787_v45 = vpop.xlane.xlu1 %1786 }
 0x443   : > { %v2186_v23 = vpop.f32.mrb[155].mxu1  ;;  %2470 = vmatmul.mubr.f32.gmra.mrb[120].mxu0 %v2257_v4  ;;  %v2259_v38 = vmul.f32 %v3221_v36, %v2184_v46  ;;  %v3115_v42 = vpop.eup %3114  ;;  %3120 = vrcp.f32 %v1787_v45 }
 0x444   : > { %v2260_v53 = vmul.f32 %v3220_v28, %v2186_v23  ;;  %v1790_v28 = vpop.xlane.xlu0 %1789 }
 0x445   : > { %3122 = vrcp.f32 %v1790_v28 }
 0x446   : > { %v2190_v11 = vpop.f32.mrb[156].mxu1  ;;  %2474 = vmatprep.mubr.f32.mxu0 %v2260_v53  ;;  %v3117_v53 = vpop.eup %3116 }
 0x447   : > { %v2192_v14 = vpop.f32.mrb[157].mxu1  ;;  %2475 = vmatmul.mubr.f32.gmra.mrb[122].mxu0 %v2259_v38  ;;  %v2261_v34 = vmul.f32 %v3223_v18, %v2190_v11 }
 0x448   : > { %v2262_v17 = vmul.f32 %v3222_v50, %v2192_v14  ;;  %v1793_v14 = vpop.xlane.xlu1 %1792  ;;  %v3119_v50 = vpop.eup %3118 }
 0x449   : > { %3124 = vrcp.f32 %v1793_v14 }
 0x44a   : > { %v2196_v0 = vpop.f32.mrb[158].mxu1  ;;  %2479 = vmatprep.mubr.f32.mxu0 %v2262_v17 }
 0x44b   : > { %v2198_v6 = vpop.f32.mrb[159].mxu1  ;;  %2480 = vmatmul.mubr.f32.gmra.mrb[124].mxu0 %v2261_v34  ;;  %v2263_v7 = vmul.f32 %v3225_v54, %v2196_v0  ;;  %v1796_v0 = vpop.xlane.xlu0 %1795 }
 0x44c   : > { %v2264_v15 = vmul.f32 %v3224_v27, %v2198_v6  ;;  %3126 = vrcp.f32 %v1796_v0 }
 0x44d   : > { %v3121_v6 = vpop.eup %3120 }
 0x44e   : > { %2484 = vmatprep.mubr.f32.mxu0 %v2264_v15 }
 0x44f   : > { %2485 = vmatmul.mubr.f32.gmra.mrb[126].mxu0 %v2263_v7  ;;  %v1799_v7 = vpop.xlane.xlu1 %1798  ;;  %v3123_v56 = vpop.eup %3122 }
 0x450   : > { %3128 = vrcp.f32 %v1799_v7 }
 0x4a4   : > { %v2331_v35 = vpop.f32.mrb[64].mxu0 }
 0x4a5   : > { %v2522_v19 = vmul.f32 %v3099_v20, %v2331_v35  ;;  %v2333_v21 = vpop.f32.mrb[65].mxu0  ;;  %v3125_v20 = vpop.eup %3124 }
 0x4a7   : > { %2554 = vst.msk [vmem:[%s4288_s30] sm:$0xff] %vm840_vm0, %v2522_v19  ;;  %v1802_v19 = vpop.xlane.xlu0 %1801 }
 0x4a8   : > { %v2336_v22 = vpop.f32.mrb[66].mxu0  ;;  %3130 = vrcp.f32 %v1802_v19 }
 0x4a9   : > { %v2523_v16 = vmul.f32 %v3101_v9, %v2336_v22  ;;  %v2338_v26 = vpop.f32.mrb[67].mxu0  ;;  %v3127_v9 = vpop.eup %3126 }
 0x4ab   : > { %2555 = vst.msk [vmem:[%s4288_s30 + $0x8] sm:$0xff] %vm840_vm0, %v2523_v16  ;;  %v1805_v16 = vpop.xlane.xlu1 %1804 }
 0x4ac   : > { %v2341_v10 = vpop.f32.mrb[68].mxu0  ;;  %3132 = vrcp.f32 %v1805_v16 }
 0x4ad   : > { %v2524_v31 = vmul.f32 %v3103_v25, %v2341_v10  ;;  %v2343_v52 = vpop.f32.mrb[69].mxu0  ;;  %v3129_v25 = vpop.eup %3128 }
 0x4af   : > { %2556 = vst.msk [vmem:[%s4288_s30 + $0x10] sm:$0xff] %vm840_vm0, %v2524_v31  ;;  %v1808_v31 = vpop.xlane.xlu0 %1807 }
 0x4b0   : > { %v2346_v12 = vpop.f32.mrb[70].mxu0  ;;  %3134 = vrcp.f32 %v1808_v31 }
 0x4b1   : > { %v2525_v8 = vmul.f32 %v3105_v49, %v2346_v12  ;;  %v2348_v1 = vpop.f32.mrb[71].mxu0  ;;  %v1811_v49 = vpop.xlane.xlu1 %1810 }
 0x4b2   : > { %v3131_v12 = vpop.eup %3130  ;;  %3136 = vrcp.f32 %v1811_v49 }
 0x4b3   : > { %2557 = vst.msk [vmem:[%s4288_s30 + $0x18] sm:$0xff] %vm840_vm0, %v2525_v8 }
 0x4b4   : > { %v2351_v39 = vpop.f32.mrb[72].mxu0 }
 0x4b5   : > { %v2526_v55 = vmul.f32 %v3107_v5, %v2351_v39  ;;  %v2353_v40 = vpop.f32.mrb[73].mxu0  ;;  %v1814_v5 = vpop.xlane.xlu0 %1813 }
 0x4b6   : > { %v3133_v39 = vpop.eup %3132  ;;  %3138 = vrcp.f32 %v1814_v5 }
 0x4b7   : > { %2558 = vst.msk [vmem:[%s4288_s30 + $0x20] sm:$0xff] %vm840_vm0, %v2526_v55 }
 0x4b8   : > { %v2356_v29 = vpop.f32.mrb[74].mxu0 }
 0x4b9   : > { %v2527_v51 = vmul.f32 %v3109_v61, %v2356_v29  ;;  %v2358_v57 = vpop.f32.mrb[75].mxu0  ;;  %v1817_v61 = vpop.xlane.xlu1 %1816 }
 0x4ba   : > { %v3135_v29 = vpop.eup %3134  ;;  %3140 = vrcp.f32 %v1817_v61 }
 0x4bb   : > { %2559 = vst.msk [vmem:[%s4288_s30 + $0x28] sm:$0xff] %vm840_vm0, %v2527_v51 }
 0x4bc   : > { %v2361_v30 = vpop.f32.mrb[76].mxu0 }
 0x4bd   : > { %v2528_v32 = vmul.f32 %v3111_v3, %v2361_v30  ;;  %v2363_v60 = vpop.f32.mrb[77].mxu0  ;;  %v1820_v3 = vpop.xlane.xlu0 %1819 }
 0x4be   : > { %v3137_v30 = vpop.eup %3136  ;;  %3142 = vrcp.f32 %v1820_v3 }
 0x4bf   : > { %2560 = vst.msk [vmem:[%s4288_s30 + $0x30] sm:$0xff] %vm840_vm0, %v2528_v32 }
 0x4c0   : > { %v2366_v43 = vpop.f32.mrb[78].mxu0 }
 0x4c1   : > { %v2529_v44 = vmul.f32 %v3113_v63, %v2366_v43  ;;  %v2368_v62 = vpop.f32.mrb[79].mxu0  ;;  %v1823_v63 = vpop.xlane.xlu1 %1822 }
 0x4c2   : > { %v3139_v43 = vpop.eup %3138  ;;  %3144 = vrcp.f32 %v1823_v63 }
 0x4c3   : > { %2561 = vst.msk [vmem:[%s4288_s30 + $0x38] sm:$0xff] %vm840_vm0, %v2529_v44 }
 0x4c4   : > { %v2371_v4 = vpop.f32.mrb[80].mxu0 }
 0x4c5   : > { %v2530_v46 = vmul.f32 %v3115_v42, %v2371_v4  ;;  %v2373_v23 = vpop.f32.mrb[81].mxu0  ;;  %v1826_v42 = vpop.xlane.xlu0 %1825 }
 0x4c6   : > { %v3141_v4 = vpop.eup %3140  ;;  %3146 = vrcp.f32 %v1826_v42 }
 0x4c7   : > { %2562 = vst.msk [vmem:[%s4288_s30 + $0x40] sm:$0xff] %vm840_vm0, %v2530_v46 }
 0x4c8   : > { %v2376_v36 = vpop.f32.mrb[82].mxu0 }
 0x4c9   : > { %v2531_v38 = vmul.f32 %v3117_v53, %v2376_v36  ;;  %v2378_v11 = vpop.f32.mrb[83].mxu0  ;;  %v1829_v53 = vpop.xlane.xlu1 %1828 }
 0x4ca   : > { %v3143_v36 = vpop.eup %3142  ;;  %3148 = vrcp.f32 %v1829_v53 }
 0x4cb   : > { %2563 = vst.msk [vmem:[%s4288_s30 + $0x48] sm:$0xff] %vm840_vm0, %v2531_v38 }
 0x4cc   : > { %v2381_v17 = vpop.f32.mrb[84].mxu0 }
 0x4cd   : > { %v2532_v18 = vmul.f32 %v3119_v50, %v2381_v17  ;;  %v2383_v34 = vpop.f32.mrb[85].mxu0  ;;  %v1832_v50 = vpop.xlane.xlu0 %1831 }
 0x4ce   : > { %v3145_v17 = vpop.eup %3144  ;;  %3150 = vrcp.f32 %v1832_v50 }
 0x4cf   : > { %2564 = vst.msk [vmem:[%s4288_s30 + $0x50] sm:$0xff] %vm840_vm0, %v2532_v18 }
 0x4d0   : > { %v2386_v27 = vpop.f32.mrb[86].mxu0 }
 0x4d1   : > { %v2533_v15 = vmul.f32 %v3121_v6, %v2386_v27  ;;  %v2388_v54 = vpop.f32.mrb[87].mxu0  ;;  %v1835_v6 = vpop.xlane.xlu1 %1834 }
 0x4d2   : > { %v3147_v27 = vpop.eup %3146  ;;  %3152 = vrcp.f32 %v1835_v6 }
 0x4d3   : > { %2565 = vst.msk [vmem:[%s4288_s30 + $0x58] sm:$0xff] %vm840_vm0, %v2533_v15 }
 0x4d4   : > { %v2391_v59 = vpop.f32.mrb[88].mxu0 }
 0x4d5   : > { %v2534_v24 = vmul.f32 %v3123_v56, %v2391_v59  ;;  %v2393_v37 = vpop.f32.mrb[89].mxu0  ;;  %v1838_v56 = vpop.xlane.xlu0 %1837 }
 0x4d6   : > { %v3149_v59 = vpop.eup %3148  ;;  %3154 = vrcp.f32 %v1838_v56 }
 0x4d7   : > { %2566 = vst.msk [vmem:[%s4288_s30 + $0x60] sm:$0xff] %vm840_vm0, %v2534_v24 }
 0x4d8   : > { %v2396_v35 = vpop.f32.mrb[90].mxu0  ;;  %v3151_v19 = vpop.eup %3150 }
 0x4d9   : > { %v2535_v21 = vmul.f32 %v3125_v20, %v2396_v35  ;;  %v2398_v47 = vpop.f32.mrb[91].mxu0  ;;  %v1841_v35 = vpop.xlane.xlu1 %1840 }
 0x4da   : > { %3156 = vrcp.f32 %v1841_v35 }
 0x4db   : > { %2567 = vst.msk [vmem:[%s4288_s30 + $0x68] sm:$0xff] %vm840_vm0, %v2535_v21 }
 0x4dc   : > { %v2401_v22 = vpop.f32.mrb[92].mxu0  ;;  %v3153_v16 = vpop.eup %3152 }
 0x4dd   : > { %v2536_v26 = vmul.f32 %v3127_v9, %v2401_v22  ;;  %v2403_v58 = vpop.f32.mrb[93].mxu0  ;;  %v1844_v22 = vpop.xlane.xlu0 %1843 }
 0x4de   : > { %3158 = vrcp.f32 %v1844_v22 }
 0x4df   : > { %2568 = vst.msk [vmem:[%s4288_s30 + $0x70] sm:$0xff] %vm840_vm0, %v2536_v26 }
 0x4e0   : > { %v2406_v10 = vpop.f32.mrb[94].mxu0  ;;  %v3155_v31 = vpop.eup %3154 }
 0x4e1   : > { %v2537_v52 = vmul.f32 %v3129_v25, %v2406_v10  ;;  %v2408_v48 = vpop.f32.mrb[95].mxu0  ;;  %v1847_v10 = vpop.xlane.xlu1 %1846 }
 0x4e2   : > { %3160 = vrcp.f32 %v1847_v10 }
 0x4e3   : > { %2569 = vst.msk [vmem:[%s4288_s30 + $0x78] sm:$0xff] %vm840_vm0, %v2537_v52 }
 0x4e6   : > { %v2411_v8 = vpop.f32.mrb[96].mxu0 }
 0x4e7   : > { %v2538_v1 = vmul.f32 %v3131_v12, %v2411_v8  ;;  %v2413_v33 = vpop.f32.mrb[97].mxu0  ;;  %v3157_v12 = vpop.eup %3156 }
 0x4e8   : > { %v3159_v5 = vpop.eup %3158 }
 0x4e9   : > { %2570 = vst.msk [vmem:[%s4288_s30 + $0x80] sm:$0xff] %vm840_vm0, %v2538_v1 }
 0x4ea   : > { %v2416_v55 = vpop.f32.mrb[98].mxu0 }
 0x4eb   : > { %v2539_v40 = vmul.f32 %v3133_v39, %v2416_v55  ;;  %v2418_v2 = vpop.f32.mrb[99].mxu0 }
 0x4ec   : > { %v3161_v2 = vpop.eup %3160 }
 0x4ed   : > { %2571 = vst.msk [vmem:[%s4288_s30 + $0x88] sm:$0xff] %vm840_vm0, %v2539_v40 }
 0x4ee   : > { %v2421_v51 = vpop.f32.mrb[100].mxu0 }
 0x4ef   : > { %v2540_v57 = vmul.f32 %v3135_v29, %v2421_v51  ;;  %v2423_v13 = vpop.f32.mrb[101].mxu0 }
 0x4f1   : > { %2572 = vst.msk [vmem:[%s4288_s30 + $0x90] sm:$0xff] %vm840_vm0, %v2540_v57 }
 0x4f2   : > { %v2426_v32 = vpop.f32.mrb[102].mxu0 }
 0x4f3   : > { %v2541_v60 = vmul.f32 %v3137_v30, %v2426_v32  ;;  %v2428_v41 = vpop.f32.mrb[103].mxu0 }
 0x4f5   : > { %2573 = vst.msk [vmem:[%s4288_s30 + $0x98] sm:$0xff] %vm840_vm0, %v2541_v60 }
 0x4f6   : > { %v2431_v44 = vpop.f32.mrb[104].mxu0 }
 0x4f7   : > { %v2542_v62 = vmul.f32 %v3139_v43, %v2431_v44  ;;  %v2433_v45 = vpop.f32.mrb[105].mxu0 }
 0x4f9   : > { %2574 = vst.msk [vmem:[%s4288_s30 + $0xa0] sm:$0xff] %vm840_vm0, %v2542_v62 }
 0x4fa   : > { %v2436_v46 = vpop.f32.mrb[106].mxu0 }
 0x4fb   : > { %v2543_v23 = vmul.f32 %v3141_v4, %v2436_v46  ;;  %v2438_v28 = vpop.f32.mrb[107].mxu0 }
 0x4fd   : > { %2575 = vst.msk [vmem:[%s4288_s30 + $0xa8] sm:$0xff] %vm840_vm0, %v2543_v23 }
 0x4fe   : > { %v2441_v38 = vpop.f32.mrb[108].mxu0 }
 0x4ff   : > { %v2544_v11 = vmul.f32 %v3143_v36, %v2441_v38  ;;  %v2443_v14 = vpop.f32.mrb[109].mxu0 }
 0x501   : > { %2576 = vst.msk [vmem:[%s4288_s30 + $0xb0] sm:$0xff] %vm840_vm0, %v2544_v11 }
 0x502   : > { %v2446_v18 = vpop.f32.mrb[110].mxu0 }
 0x503   : > { %v2545_v34 = vmul.f32 %v3145_v17, %v2446_v18  ;;  %v2448_v0 = vpop.f32.mrb[111].mxu0 }
 0x505   : > { %2577 = vst.msk [vmem:[%s4288_s30 + $0xb8] sm:$0xff] %vm840_vm0, %v2545_v34 }
 0x506   : > { %v2451_v15 = vpop.f32.mrb[112].mxu0 }
 0x507   : > { %v2546_v54 = vmul.f32 %v3147_v27, %v2451_v15  ;;  %v2453_v7 = vpop.f32.mrb[113].mxu0 }
 0x509   : > { %2578 = vst.msk [vmem:[%s4288_s30 + $0xc0] sm:$0xff] %vm840_vm0, %v2546_v54 }
 0x50a   : > { %v2456_v24 = vpop.f32.mrb[114].mxu0 }
 0x50b   : > { %v2547_v37 = vmul.f32 %v3149_v59, %v2456_v24  ;;  %v2458_v20 = vpop.f32.mrb[115].mxu0 }
 0x50d   : > { %2579 = vst.msk [vmem:[%s4288_s30 + $0xc8] sm:$0xff] %vm840_vm0, %v2547_v37 }
 0x50e   : > { %v2461_v21 = vpop.f32.mrb[116].mxu0 }
 0x50f   : > { %v2548_v47 = vmul.f32 %v3151_v19, %v2461_v21  ;;  %v2463_v9 = vpop.f32.mrb[117].mxu0 }
 0x511   : > { %2580 = vst.msk [vmem:[%s4288_s30 + $0xd0] sm:$0xff] %vm840_vm0, %v2548_v47 }
 0x512   : > { %v2466_v26 = vpop.f32.mrb[118].mxu0 }
 0x513   : > { %v2549_v58 = vmul.f32 %v3153_v16, %v2466_v26  ;;  %v2468_v25 = vpop.f32.mrb[119].mxu0 }
 0x515   : > { %2581 = vst.msk [vmem:[%s4288_s30 + $0xd8] sm:$0xff] %vm840_vm0, %v2549_v58 }
 0x516   : > { %v2471_v52 = vpop.f32.mrb[120].mxu0 }
 0x517   : > { %v2550_v48 = vmul.f32 %v3155_v31, %v2471_v52  ;;  %v2473_v49 = vpop.f32.mrb[121].mxu0 }
 0x519   : > { %2582 = vst.msk [vmem:[%s4288_s30 + $0xe0] sm:$0xff] %vm840_vm0, %v2550_v48 }
 0x51a   : > { %v2476_v8 = vpop.f32.mrb[122].mxu0 }
 0x51b   : > { %v2551_v1 = vmul.f32 %v3157_v12, %v2476_v8  ;;  %v2478_v33 = vpop.f32.mrb[123].mxu0 }
 0x51d   : > { %2583 = vst.msk [vmem:[%s4288_s30 + $0xe8] sm:$0xff] %vm840_vm0, %v2551_v1 }
 0x51e   : > { %v2481_v39 = vpop.f32.mrb[124].mxu0 }
 0x51f   : > { %v2552_v55 = vmul.f32 %v3159_v5, %v2481_v39  ;;  %v2483_v40 = vpop.f32.mrb[125].mxu0 }
 0x521   : > { %2584 = vst.msk [vmem:[%s4288_s30 + $0xf0] sm:$0xff] %vm840_vm0, %v2552_v55 }
 0x522   : > { %v2486_v61 = vpop.f32.mrb[126].mxu0 }
 0x523   : > { %v2553_v29 = vmul.f32 %v3161_v2, %v2486_v61  ;;  %v2488_v51 = vpop.f32.mrb[127].mxu0 }
 0x525   : > { %2585 = vst.msk [vmem:[%s4288_s30 + $0xf8] sm:$0xff] %vm840_vm0, %v2553_v29 }
 0x526 PF: > { %s19_s27 = sadd.s32 1, %s3264_s27  }
 0x527   : > { %p16_p3 = scmp.ge.s32.totalorder %s19_s27, 4  }
 0x529   :  { %18 = sbr.rel (!%p16_p3) target bundleno = 1 (0x1), region = 90 }
 0x530   :  { %2608 = vsyncpa [#allocation3], 1 }
 0x531   :  { %2610 = vsyncpa [#allocation3 + $0x1], 1 }

</bundles_post_ra>
